<compile_context>
chip_gen: v7x
topology: tpu7x:2x2x1
jax: 0.10.0
libtpu: 0.0.40
codegen_flags: <defaults>
</compile_context>

<pallas_src>
import functools

import jax
import jax.numpy as jnp
from jax import lax
from jax.experimental import pallas as pl
from jax.experimental.pallas import tpu as pltpu


# ----------------------------- configuration ------------------------------ #

TM_MAX = 512              # output-row tile (im2col rows); real-size layers get
                          # multiple parallel M blocks (megacore / v7x 2 TCs)
TN_MAX = 256              # output-channel tile (multiple of 128)
TK_MAX = 2048             # contraction tile; K <= TK_MAX collapses the K grid
LANE = 128
SUBLANE_BF16 = 16         # bf16 packs 16 rows per sublane tile
EPS = 1e-5                # BatchNorm2d default eps
SLOPE = 0.2               # LeakyReLU slope
COMPUTE_DTYPE = jnp.bfloat16   # MXU input dtype (f32 accumulation)
ACT_DTYPE = jnp.bfloat16       # inter-layer activation storage dtype


def _round_up(x, m):
    return (x + m - 1) // m * m


@functools.lru_cache(maxsize=None)
def _vmem_limit_bytes():
    """Generation-aware scoped-VMEM budget (v7x: 64 MiB phys; v5e/v6e: 128)."""
    cap = None
    try:
        cap = getattr(pltpu.get_tpu_info(), "vmem_capacity_bytes", None)
    except Exception:
        cap = None
    if not cap:
        cap = 64 * 1024 * 1024            # conservative (v7x-sized) fallback
    return int(min(cap * 3 // 4, 100 * 1024 * 1024))


def _compiler_params(semantics):
    return pltpu.CompilerParams(dimension_semantics=semantics,
                                vmem_limit_bytes=_vmem_limit_bytes())


# ------------------------------ Pallas kernel ------------------------------ #

def _conv_epilogue(y, b_ref, o_ref, stats_ref, use_bias, use_act, emit_stats):
    """Fused bias + LeakyReLU (non-BN layers) / partial BN stats (BN layers)."""
    if use_bias:
        y = y + b_ref[...]
    if use_act:
        y = jnp.maximum(y, SLOPE * y)               # LeakyReLU(0.2)
    o_ref[...] = y.astype(o_ref.dtype)
    if emit_stats:
        # Two plain lane-dense row stores (no concat/reshape relayout).
        # Zero-padded rows of the im2col matrix give y == 0 (BN layers have no
        # bias), so padding never biases the statistics.
        stats_ref[0, 0:1, :] = jnp.sum(y, axis=0, keepdims=True)
        stats_ref[0, 1:2, :] = jnp.sum(y * y, axis=0, keepdims=True)


def _matmul_fused_kernel(*refs, use_bias, use_act, emit_stats, multi_k):
    """Tiled conv-as-matmul with fused epilogue.

    refs = (x, w, [bias], y_out, [stats_out], [acc_scratch])
      x:     (TM, TK)    bf16 im2col tile
      w:     (TK, TN)    bf16 weight tile
      bias:  (1,  TN)    f32  (only when use_bias)
      y_out: (TM, TN)    bf16/f32 conv (+bias, +LeakyReLU) output tile
      stats: (1, 2, TN)  f32 per-(M tile, channel) [sum, sum of squares]
      acc:   (TM, TN)    f32 VMEM accumulator (only when the K grid has >1 step)
    """
    it = iter(refs)
    x_ref, w_ref = next(it), next(it)
    b_ref = next(it) if use_bias else None
    o_ref = next(it)
    stats_ref = next(it) if emit_stats else None

    if multi_k:
        acc_ref = next(it)
        k = pl.program_id(2)

        @pl.when(k == 0)
        def _():
            acc_ref[...] = jnp.zeros_like(acc_ref)

        acc_ref[...] += jnp.dot(x_ref[...], w_ref[...],
                                preferred_element_type=jnp.float32)

        @pl.when(k == pl.num_programs(2) - 1)
        def _():
            _conv_epilogue(acc_ref[...], b_ref, o_ref, stats_ref,
                           use_bias, use_act, emit_stats)
    else:
        # Single K step: no accumulator scratch, no epilogue copy.
        y = jnp.dot(x_ref[...], w_ref[...], preferred_element_type=jnp.float32)
        _conv_epilogue(y, b_ref, o_ref, stats_ref, use_bias, use_act, emit_stats)


# ------------------------------ layer driver ------------------------------- #

def fused_conv_layer(x_nhwc, layer, pending, out_dtype):
    """One layer.  `pending` = (scale, shift, act) from the previous BN layer,
    applied here (fused by XLA with pad + im2col) before this conv."""
    w = layer['w']
    stride = layer['s']
    use_bias = layer['use_bias']
    use_bn = layer['use_bn']
    use_act = layer['use_act']
    assert not (use_bn and use_bias), "BN stats assume bias-free conv"

    # --- XLA glue: pending BN+act, zero-pad, im2col, all in one fused pass ----
    x = x_nhwc
    if pending is not None:
        scale, shift, act = pending
        x = x.astype(jnp.float32) * scale + shift
        if act:
            x = jnp.where(x > 0, x, SLOPE * x)
    x = x.astype(COMPUTE_DTYPE)

    N, H, W, Cin = x.shape
    Cout, _, kH, kW = w.shape
    p = 1
    OH = (H + 2 * p - kH) // stride + 1
    OW = (W + 2 * p - kW) // stride + 1
    M, K = N * OH * OW, kH * kW * Cin

    # TODO(synk): in-kernel im2col via halo DMA (memory_space=pl.ANY) to remove
    # the remaining HBM duplication of activations.
    xpad = jnp.pad(x, ((0, 0), (p, p), (p, p), (0, 0)))
    cols = []
    for kh in range(kH):
        for kw in range(kW):
            cols.append(xpad[:, kh:kh + stride * (OH - 1) + 1:stride,
                                kw:kw + stride * (OW - 1) + 1:stride, :])
    xmat = jnp.stack(cols, axis=3).reshape(M, K)                  # (M, K) bf16
    wmat = jnp.transpose(w, (2, 3, 1, 0)).reshape(K, Cout)        # (K, Cout)

    # --- tile selection: large lane-dense tiles, K collapsed when possible ----
    TM = min(TM_MAX, _round_up(M, SUBLANE_BF16))
    TN = min(TN_MAX, _round_up(Cout, LANE))
    TK = K if K <= TK_MAX else TK_MAX     # K == full extent is a legal block dim
    Mp, Cp, Kp = _round_up(M, TM), _round_up(Cout, TN), _round_up(K, TK)

    xmat = jnp.pad(xmat, ((0, Mp - M), (0, Kp - K)))
    wmat = jnp.pad(wmat, ((0, Kp - K), (0, Cp - Cout))).astype(COMPUTE_DTYPE)

    nm, nn, nk = Mp // TM, Cp // TN, Kp // TK
    multi_k = nk > 1

    if multi_k:
        grid = (nm, nn, nk)
        semantics = ("parallel", "parallel", "arbitrary")
        x_spec = pl.BlockSpec((TM, TK), lambda i, j, k: (i, k))
        w_spec = pl.BlockSpec((TK, TN), lambda i, j, k: (k, j))
        b_spec = pl.BlockSpec((1, TN), lambda i, j, k: (0, j))
        y_spec = pl.BlockSpec((TM, TN), lambda i, j, k: (i, j))
        s_spec = pl.BlockSpec((1, 2, TN), lambda i, j, k: (i, 0, j))
        scratch = [pltpu.VMEM((TM, TN), jnp.float32)]
    else:
        grid = (nm, nn)
        semantics = ("parallel", "parallel")
        x_spec = pl.BlockSpec((TM, TK), lambda i, j: (i, 0))
        w_spec = pl.BlockSpec((TK, TN), lambda i, j: (0, j))
        b_spec = pl.BlockSpec((1, TN), lambda i, j: (0, j))
        y_spec = pl.BlockSpec((TM, TN), lambda i, j: (i, j))
        s_spec = pl.BlockSpec((1, 2, TN), lambda i, j: (i, 0, j))
        scratch = []

    in_specs, args = [x_spec, w_spec], [xmat, wmat]
    if use_bias:   # only DMA a bias ref when the layer actually has one
        in_specs.append(b_spec)
        args.append(jnp.pad(layer['b'], (0, Cp - Cout))
                    .reshape(1, Cp).astype(jnp.float32))

    y_shape = jax.ShapeDtypeStruct((Mp, Cp), out_dtype)
    if use_bn:
        out_shape = (y_shape, jax.ShapeDtypeStruct((nm, 2, Cp), jnp.float32))
        out_specs = (y_spec, s_spec)
    else:
        out_shape, out_specs = y_shape, y_spec

    cost = pl.CostEstimate(
        flops=2 * Mp * Kp * Cp, transcendentals=0,
        bytes_accessed=(Mp * Kp * 2 * nn + Kp * Cp * 2 * nm
                        + Mp * Cp * jnp.dtype(out_dtype).itemsize))

    kern = functools.partial(_matmul_fused_kernel, use_bias=use_bias,
                             use_act=(use_act and not use_bn),
                             emit_stats=use_bn, multi_k=multi_k)
    result = pl.pallas_call(
        kern,
        out_shape=out_shape,
        grid_spec=pltpu.PrefetchScalarGridSpec(
            num_scalar_prefetch=0, grid=grid,
            in_specs=in_specs, out_specs=out_specs,
            scratch_shapes=scratch),
        compiler_params=_compiler_params(semantics),
        cost_estimate=cost,
    )(*args)

    if use_bn:
        ymat, stats = result
        # Chan-style combine of the per-M-tile partial sums: center each tile
        # first to avoid the E[y^2] - E[y]^2 cancellation of a global combine.
        counts = jnp.clip(M - TM * jnp.arange(nm), 1, TM).astype(jnp.float32)
        s1 = stats[:, 0, :Cout]                                   # (nm, Cout)
        s2 = stats[:, 1, :Cout]
        mean_i = s1 / counts[:, None]
        m2_i = jnp.maximum(s2 - s1 * mean_i, 0.0)
        mean = jnp.sum(s1, axis=0) / M                            # true M, not Mp
        var = (jnp.sum(m2_i, axis=0)
               + jnp.sum(counts[:, None] * jnp.square(mean_i - mean[None, :]),
                         axis=0)) / M
        var = jnp.maximum(var, 0.0)                               # biased (PyTorch)
        scale = layer['gamma'] * lax.rsqrt(var + EPS)
        shift = layer['beta'] - mean * scale
        new_pending = (scale, shift, use_act)   # applied in the next layer's glue
    else:
        ymat = result
        new_pending = None

    y = ymat[:M, :Cout].reshape(N, OH, OW, Cout)
    return y, new_pending


# --------------------------- model construction ---------------------------- #

def init_params(key, input_c, num_filters=64, n_down=3):
    """Deterministic synthetic parameters mirroring PatchDiscriminator.__init__."""
    cfgs = [dict(ni=input_c, nf=num_filters, s=2, norm=False, act=True)]
    for i in range(n_down):
        cfgs.append(dict(ni=num_filters * 2 ** i, nf=num_filters * 2 ** (i + 1),
                         s=1 if i == n_down - 1 else 2, norm=True, act=True))
    cfgs.append(dict(ni=num_filters * 2 ** n_down, nf=1, s=1, norm=False, act=False))

    layers = []
    for cfg in cfgs:
        key, k_w, k_b = jax.random.split(key, 3)
        w = 0.05 * jax.random.normal(k_w, (cfg['nf'], cfg['ni'], 4, 4), jnp.float32)
        use_bias = not cfg['norm']                   # bias=not norm, as in get_layers
        b = (0.05 * jax.random.normal(k_b, (cfg['nf'],), jnp.float32)
             if use_bias else jnp.zeros((cfg['nf'],), jnp.float32))
        layers.append(dict(w=w, b=b,
                           gamma=jnp.ones((cfg['nf'],), jnp.float32),
                           beta=jnp.zeros((cfg['nf'],), jnp.float32),
                           s=cfg['s'], use_bias=use_bias,
                           use_bn=cfg['norm'], use_act=cfg['act']))
    return layers


def patch_discriminator_forward(x_nchw, params):
    x = jnp.transpose(x_nchw, (0, 2, 3, 1))        # NCHW -> NHWC
    pending = None
    for idx, layer in enumerate(params):
        is_last = idx == len(params) - 1
        out_dtype = jnp.float32 if is_last else ACT_DTYPE
        x, pending = fused_conv_layer(x, layer, pending, out_dtype)
    if pending is not None:                         # only if a model ends in BN
        scale, shift, act = pending
        x = x.astype(jnp.float32) * scale + shift
        if act:
            x = jnp.where(x > 0, x, SLOPE * x)
    return jnp.transpose(x, (0, 3, 1, 2)).astype(jnp.float32)   # NHWC -> NCHW


# ------------------------- pure-JAX reference check ------------------------ #

def reference_forward(x_nchw, params, conv_dtype=jnp.float32):
    y = x_nchw
    for layer in params:
        y = lax.conv_general_dilated(
            y.astype(conv_dtype), layer['w'].astype(conv_dtype),
            window_strides=(layer['s'], layer['s']),
            padding=((1, 1), (1, 1)),
            dimension_numbers=('NCHW', 'OIHW', 'NCHW'),
            preferred_element_type=jnp.float32)
        if layer['use_bias']:
            y = y + layer['b'][None, :, None, None]
        if layer['use_bn']:
            m = jnp.mean(y, axis=(0, 2, 3), keepdims=True)
            v = jnp.mean(jnp.square(y - m), axis=(0, 2, 3), keepdims=True)
            y = ((y - m) / jnp.sqrt(v + EPS) * layer['gamma'][None, :, None, None]
                 + layer['beta'][None, :, None, None])
        if layer['use_act']:
            y = jnp.where(y > 0, y, SLOPE * y)
    return y


# ---------------------------------- main ----------------------------------- #

if __name__ == "__main__":
    key = jax.random.PRNGKey(0)
    k_param, k_x = jax.random.split(key)

    # Smallest spatial size (32x32) that keeps every conv output non-empty for
    # k=4, n_down=3; num_filters kept small for a quick test.
    input_c, num_filters, n_down = 3, 8, 3
    x = jax.random.normal(k_x, (2, input_c, 32, 32), jnp.float32)
    params = init_params(k_param, input_c, num_filters=num_filters, n_down=n_down)

    fwd = jax.jit(lambda xx: patch_discriminator_forward(xx, params))
    out = jax.block_until_ready(fwd(x))

    # Reference with matching bf16 matmul inputs (tight check) and full-f32
    # reference (loose check; the kernel stores bf16 activations by design).
    ref_mixed = jax.block_until_ready(
        reference_forward(x, params, conv_dtype=COMPUTE_DTYPE))
    ref_f32 = jax.block_until_ready(reference_forward(x, params))

    assert out.shape == ref_f32.shape == (2, 1, 2, 2), out.shape
    err_mixed = float(jnp.max(jnp.abs(out - ref_mixed)))
    assert jnp.allclose(out, ref_mixed, rtol=3e-2, atol=3e-2), err_mixed
    err_f32 = float(jnp.max(jnp.abs(out - ref_f32)))
    assert jnp.allclose(out, ref_f32, rtol=2e-1, atol=2e-1), err_f32

    print("KERNEL_OK")
</pallas_src>

<mosaic_0001>
module attributes {stable_mosaic.version = 11 : i64} {
  func.func @_matmul_fused_kernel(%arg0: i32, %arg1: i32, %arg2: memref<512x48xbf16, #tpu.memory_space<vmem>>, %arg3: memref<48x128xbf16, #tpu.memory_space<vmem>>, %arg4: memref<1x128xf32, #tpu.memory_space<vmem>>, %arg5: memref<512x128xbf16, #tpu.memory_space<vmem>>) attributes {dimension_semantics = [#tpu.dimension_semantics<parallel>, #tpu.dimension_semantics<parallel>], iteration_bounds = array<i64: 1, 1>, scalar_prefetch = 0 : i64, scratch_operands = 0 : i64, tpu.core_type = #tpu.core_type<tc>, window_params = [{transform_indices = @transform_0, window_bounds = array<i64: 512, 48>}, {transform_indices = @transform_1, window_bounds = array<i64: 48, 128>}, {transform_indices = @transform_2, window_bounds = array<i64: 1, 128>}, {transform_indices = @transform_3, window_bounds = array<i64: 512, 128>}]} {
    %c0 = arith.constant 0 : index
    %c0_0 = arith.constant 0 : index
    %0 = vector.load %arg2[%c0, %c0_0] : memref<512x48xbf16, #tpu.memory_space<vmem>>, vector<512x48xbf16>
    %c0_1 = arith.constant 0 : index
    %c0_2 = arith.constant 0 : index
    %1 = vector.load %arg3[%c0_1, %c0_2] : memref<48x128xbf16, #tpu.memory_space<vmem>>, vector<48x128xbf16>
    %cst = arith.constant dense<0.000000e+00> : vector<512x128xf32>
    %2 = tpu.matmul %0, %1, %cst {dimension_numbers = #tpu.dot_dimension_numbers<[1], [0], [0], [1], [0, 0, 1, 1], [], []>} : vector<512x48xbf16>, vector<48x128xbf16>, vector<512x128xf32> -> vector<512x128xf32>
    %c0_3 = arith.constant 0 : index
    %c0_4 = arith.constant 0 : index
    %3 = vector.load %arg4[%c0_3, %c0_4] : memref<1x128xf32, #tpu.memory_space<vmem>>, vector<1x128xf32>
    %4 = vector.broadcast %3 : vector<1x128xf32> to vector<512x128xf32>
    %5 = arith.addf %2, %4 : vector<512x128xf32>
    %cst_5 = arith.constant 2.000000e-01 : f32
    %6 = vector.broadcast %cst_5 : f32 to vector<512x128xf32>
    %7 = arith.mulf %6, %5 : vector<512x128xf32>
    %8 = arith.maximumf %5, %7 : vector<512x128xf32>
    %9 = arith.truncf %8 : vector<512x128xf32> to vector<512x128xbf16>
    %c0_6 = arith.constant 0 : index
    %c0_7 = arith.constant 0 : index
    %10 = vector.load %arg5[%c0_6, %c0_7] : memref<512x128xbf16, #tpu.memory_space<vmem>>, vector<512x128xbf16>
    tpu.vector_store %arg5[%c0_6, %c0_7], %9 {strides = array<i32>} : memref<512x128xbf16, #tpu.memory_space<vmem>>, vector<512x128xbf16>,
    return
  }
  func.func @transform_0(%arg0: i32, %arg1: i32) -> (i32, i32) {
    %c0_i32 = arith.constant 0 : i32
    %c0_i32_0 = arith.constant 0 : i32
    return %arg0, %c0_i32 : i32, i32
  }
  func.func @transform_1(%arg0: i32, %arg1: i32) -> (i32, i32) {
    %c0_i32 = arith.constant 0 : i32
    %c0_i32_0 = arith.constant 0 : i32
    return %c0_i32, %arg1 : i32, i32
  }
  func.func @transform_2(%arg0: i32, %arg1: i32) -> (i32, i32) {
    %c0_i32 = arith.constant 0 : i32
    %c0_i32_0 = arith.constant 0 : i32
    return %c0_i32, %arg1 : i32, i32
  }
  func.func @transform_3(%arg0: i32, %arg1: i32) -> (i32, i32) {
    %c0_i32 = arith.constant 0 : i32
    return %arg0, %arg1 : i32, i32
  }
}

module attributes {stable_mosaic.version = 11 : i64} {
  func.func @_matmul_fused_kernel(%arg0: i32, %arg1: i32, %arg2: memref<128x128xbf16, #tpu.memory_space<vmem>>, %arg3: memref<128x128xbf16, #tpu.memory_space<vmem>>, %arg4: memref<128x128xbf16, #tpu.memory_space<vmem>>, %arg5: memref<1x2x128xf32, #tpu.memory_space<vmem>>) attributes {dimension_semantics = [#tpu.dimension_semantics<parallel>, #tpu.dimension_semantics<parallel>], iteration_bounds = array<i64: 1, 1>, scalar_prefetch = 0 : i64, scratch_operands = 0 : i64, tpu.core_type = #tpu.core_type<tc>, window_params = [{transform_indices = @transform_0, window_bounds = array<i64: 128, 128>}, {transform_indices = @transform_1, window_bounds = array<i64: 128, 128>}, {transform_indices = @transform_2, window_bounds = array<i64: 128, 128>}, {transform_indices = @transform_3, window_bounds = array<i64: 1, 2, 128>}]} {
    %c0 = arith.constant 0 : index
    %c0_0 = arith.constant 0 : index
    %0 = vector.load %arg2[%c0, %c0_0] : memref<128x128xbf16, #tpu.memory_space<vmem>>, vector<128x128xbf16>
    %c0_1 = arith.constant 0 : index
    %c0_2 = arith.constant 0 : index
    %1 = vector.load %arg3[%c0_1, %c0_2] : memref<128x128xbf16, #tpu.memory_space<vmem>>, vector<128x128xbf16>
    %cst = arith.constant dense<0.000000e+00> : vector<128x128xf32>
    %2 = tpu.matmul %0, %1, %cst {dimension_numbers = #tpu.dot_dimension_numbers<[1], [0], [0], [1], [0, 0, 1, 1], [], []>} : vector<128x128xbf16>, vector<128x128xbf16>, vector<128x128xf32> -> vector<128x128xf32>
    %3 = arith.truncf %2 : vector<128x128xf32> to vector<128x128xbf16>
    %c0_3 = arith.constant 0 : index
    %c0_4 = arith.constant 0 : index
    %4 = vector.load %arg4[%c0_3, %c0_4] : memref<128x128xbf16, #tpu.memory_space<vmem>>, vector<128x128xbf16>
    tpu.vector_store %arg4[%c0_3, %c0_4], %3 {strides = array<i32>} : memref<128x128xbf16, #tpu.memory_space<vmem>>, vector<128x128xbf16>,
    %cst_5 = arith.constant dense<0.000000e+00> : vector<128xf32>
    %5 = vector.multi_reduction <add>, %2, %cst_5 [0] : vector<128x128xf32> to vector<128xf32>
    %6 = vector.shape_cast %5 : vector<128xf32> to vector<1x128xf32>
    %c0_6 = arith.constant 0 : index
    %c0_7 = arith.constant 0 : index
    %c0_8 = arith.constant 0 : index
    %7 = vector.load %arg5[%c0_6, %c0_7, %c0_8] : memref<1x2x128xf32, #tpu.memory_space<vmem>>, vector<1x1x128xf32>
    %8 = vector.shape_cast %7 : vector<1x1x128xf32> to vector<1x128xf32>
    %9 = vector.shape_cast %6 : vector<1x128xf32> to vector<1x1x128xf32>
    tpu.vector_store %arg5[%c0_6, %c0_7, %c0_8], %9 {strides = array<i32>} : memref<1x2x128xf32, #tpu.memory_space<vmem>>, vector<1x1x128xf32>,
    %10 = arith.mulf %2, %2 : vector<128x128xf32>
    %cst_9 = arith.constant dense<0.000000e+00> : vector<128xf32>
    %11 = vector.multi_reduction <add>, %10, %cst_9 [0] : vector<128x128xf32> to vector<128xf32>
    %12 = vector.shape_cast %11 : vector<128xf32> to vector<1x128xf32>
    %c0_10 = arith.constant 0 : index
    %c1 = arith.constant 1 : index
    %c0_11 = arith.constant 0 : index
    %13 = vector.load %arg5[%c0_10, %c1, %c0_11] : memref<1x2x128xf32, #tpu.memory_space<vmem>>, vector<1x1x128xf32>
    %14 = vector.shape_cast %13 : vector<1x1x128xf32> to vector<1x128xf32>
    %15 = vector.shape_cast %12 : vector<1x128xf32> to vector<1x1x128xf32>
    tpu.vector_store %arg5[%c0_10, %c1, %c0_11], %15 {strides = array<i32>} : memref<1x2x128xf32, #tpu.memory_space<vmem>>, vector<1x1x128xf32>,
    return
  }
  func.func @transform_0(%arg0: i32, %arg1: i32) -> (i32, i32) {
    %c0_i32 = arith.constant 0 : i32
    %c0_i32_0 = arith.constant 0 : i32
    return %arg0, %c0_i32 : i32, i32
  }
  func.func @transform_1(%arg0: i32, %arg1: i32) -> (i32, i32) {
    %c0_i32 = arith.constant 0 : i32
    %c0_i32_0 = arith.constant 0 : i32
    return %c0_i32, %arg1 : i32, i32
  }
  func.func @transform_2(%arg0: i32, %arg1: i32) -> (i32, i32) {
    %c0_i32 = arith.constant 0 : i32
    return %arg0, %arg1 : i32, i32
  }
  func.func @transform_3(%arg0: i32, %arg1: i32) -> (i32, i32, i32) {
    %c0_i32 = arith.constant 0 : i32
    %c0_i32_0 = arith.constant 0 : i32
    return %arg0, %c0_i32, %arg1 : i32, i32, i32
  }
}

module attributes {stable_mosaic.version = 11 : i64} {
  func.func @_matmul_fused_kernel(%arg0: i32, %arg1: i32, %arg2: memref<32x256xbf16, #tpu.memory_space<vmem>>, %arg3: memref<256x128xbf16, #tpu.memory_space<vmem>>, %arg4: memref<32x128xbf16, #tpu.memory_space<vmem>>, %arg5: memref<1x2x128xf32, #tpu.memory_space<vmem>>) attributes {dimension_semantics = [#tpu.dimension_semantics<parallel>, #tpu.dimension_semantics<parallel>], iteration_bounds = array<i64: 1, 1>, scalar_prefetch = 0 : i64, scratch_operands = 0 : i64, tpu.core_type = #tpu.core_type<tc>, window_params = [{transform_indices = @transform_0, window_bounds = array<i64: 32, 256>}, {transform_indices = @transform_1, window_bounds = array<i64: 256, 128>}, {transform_indices = @transform_2, window_bounds = array<i64: 32, 128>}, {transform_indices = @transform_3, window_bounds = array<i64: 1, 2, 128>}]} {
    %c0 = arith.constant 0 : index
    %c0_0 = arith.constant 0 : index
    %0 = vector.load %arg2[%c0, %c0_0] : memref<32x256xbf16, #tpu.memory_space<vmem>>, vector<32x256xbf16>
    %c0_1 = arith.constant 0 : index
    %c0_2 = arith.constant 0 : index
    %1 = vector.load %arg3[%c0_1, %c0_2] : memref<256x128xbf16, #tpu.memory_space<vmem>>, vector<256x128xbf16>
    %cst = arith.constant dense<0.000000e+00> : vector<32x128xf32>
    %2 = tpu.matmul %0, %1, %cst {dimension_numbers = #tpu.dot_dimension_numbers<[1], [0], [0], [1], [0, 0, 1, 1], [], []>} : vector<32x256xbf16>, vector<256x128xbf16>, vector<32x128xf32> -> vector<32x128xf32>
    %3 = arith.truncf %2 : vector<32x128xf32> to vector<32x128xbf16>
    %c0_3 = arith.constant 0 : index
    %c0_4 = arith.constant 0 : index
    %4 = vector.load %arg4[%c0_3, %c0_4] : memref<32x128xbf16, #tpu.memory_space<vmem>>, vector<32x128xbf16>
    tpu.vector_store %arg4[%c0_3, %c0_4], %3 {strides = array<i32>} : memref<32x128xbf16, #tpu.memory_space<vmem>>, vector<32x128xbf16>,
    %cst_5 = arith.constant dense<0.000000e+00> : vector<128xf32>
    %5 = vector.multi_reduction <add>, %2, %cst_5 [0] : vector<32x128xf32> to vector<128xf32>
    %6 = vector.shape_cast %5 : vector<128xf32> to vector<1x128xf32>
    %c0_6 = arith.constant 0 : index
    %c0_7 = arith.constant 0 : index
    %c0_8 = arith.constant 0 : index
    %7 = vector.load %arg5[%c0_6, %c0_7, %c0_8] : memref<1x2x128xf32, #tpu.memory_space<vmem>>, vector<1x1x128xf32>
    %8 = vector.shape_cast %7 : vector<1x1x128xf32> to vector<1x128xf32>
    %9 = vector.shape_cast %6 : vector<1x128xf32> to vector<1x1x128xf32>
    tpu.vector_store %arg5[%c0_6, %c0_7, %c0_8], %9 {strides = array<i32>} : memref<1x2x128xf32, #tpu.memory_space<vmem>>, vector<1x1x128xf32>,
    %10 = arith.mulf %2, %2 : vector<32x128xf32>
    %cst_9 = arith.constant dense<0.000000e+00> : vector<128xf32>
    %11 = vector.multi_reduction <add>, %10, %cst_9 [0] : vector<32x128xf32> to vector<128xf32>
    %12 = vector.shape_cast %11 : vector<128xf32> to vector<1x128xf32>
    %c0_10 = arith.constant 0 : index
    %c1 = arith.constant 1 : index
    %c0_11 = arith.constant 0 : index
    %13 = vector.load %arg5[%c0_10, %c1, %c0_11] : memref<1x2x128xf32, #tpu.memory_space<vmem>>, vector<1x1x128xf32>
    %14 = vector.shape_cast %13 : vector<1x1x128xf32> to vector<1x128xf32>
    %15 = vector.shape_cast %12 : vector<1x128xf32> to vector<1x1x128xf32>
    tpu.vector_store %arg5[%c0_10, %c1, %c0_11], %15 {strides = array<i32>} : memref<1x2x128xf32, #tpu.memory_space<vmem>>, vector<1x1x128xf32>,
    return
  }
  func.func @transform_0(%arg0: i32, %arg1: i32) -> (i32, i32) {
    %c0_i32 = arith.constant 0 : i32
    %c0_i32_0 = arith.constant 0 : i32
    return %arg0, %c0_i32 : i32, i32
  }
  func.func @transform_1(%arg0: i32, %arg1: i32) -> (i32, i32) {
    %c0_i32 = arith.constant 0 : i32
    %c0_i32_0 = arith.constant 0 : i32
    return %c0_i32, %arg1 : i32, i32
  }
  func.func @transform_2(%arg0: i32, %arg1: i32) -> (i32, i32) {
    %c0_i32 = arith.constant 0 : i32
    return %arg0, %arg1 : i32, i32
  }
  func.func @transform_3(%arg0: i32, %arg1: i32) -> (i32, i32, i32) {
    %c0_i32 = arith.constant 0 : i32
    %c0_i32_0 = arith.constant 0 : i32
    return %arg0, %c0_i32, %arg1 : i32, i32, i32
  }
}

module attributes {stable_mosaic.version = 11 : i64} {
  func.func @_matmul_fused_kernel(%arg0: i32, %arg1: i32, %arg2: memref<32x512xbf16, #tpu.memory_space<vmem>>, %arg3: memref<512x128xbf16, #tpu.memory_space<vmem>>, %arg4: memref<32x128xbf16, #tpu.memory_space<vmem>>, %arg5: memref<1x2x128xf32, #tpu.memory_space<vmem>>) attributes {dimension_semantics = [#tpu.dimension_semantics<parallel>, #tpu.dimension_semantics<parallel>], iteration_bounds = array<i64: 1, 1>, scalar_prefetch = 0 : i64, scratch_operands = 0 : i64, tpu.core_type = #tpu.core_type<tc>, window_params = [{transform_indices = @transform_0, window_bounds = array<i64: 32, 512>}, {transform_indices = @transform_1, window_bounds = array<i64: 512, 128>}, {transform_indices = @transform_2, window_bounds = array<i64: 32, 128>}, {transform_indices = @transform_3, window_bounds = array<i64: 1, 2, 128>}]} {
    %c0 = arith.constant 0 : index
    %c0_0 = arith.constant 0 : index
    %0 = vector.load %arg2[%c0, %c0_0] : memref<32x512xbf16, #tpu.memory_space<vmem>>, vector<32x512xbf16>
    %c0_1 = arith.constant 0 : index
    %c0_2 = arith.constant 0 : index
    %1 = vector.load %arg3[%c0_1, %c0_2] : memref<512x128xbf16, #tpu.memory_space<vmem>>, vector<512x128xbf16>
    %cst = arith.constant dense<0.000000e+00> : vector<32x128xf32>
    %2 = tpu.matmul %0, %1, %cst {dimension_numbers = #tpu.dot_dimension_numbers<[1], [0], [0], [1], [0, 0, 1, 1], [], []>} : vector<32x512xbf16>, vector<512x128xbf16>, vector<32x128xf32> -> vector<32x128xf32>
    %3 = arith.truncf %2 : vector<32x128xf32> to vector<32x128xbf16>
    %c0_3 = arith.constant 0 : index
    %c0_4 = arith.constant 0 : index
    %4 = vector.load %arg4[%c0_3, %c0_4] : memref<32x128xbf16, #tpu.memory_space<vmem>>, vector<32x128xbf16>
    tpu.vector_store %arg4[%c0_3, %c0_4], %3 {strides = array<i32>} : memref<32x128xbf16, #tpu.memory_space<vmem>>, vector<32x128xbf16>,
    %cst_5 = arith.constant dense<0.000000e+00> : vector<128xf32>
    %5 = vector.multi_reduction <add>, %2, %cst_5 [0] : vector<32x128xf32> to vector<128xf32>
    %6 = vector.shape_cast %5 : vector<128xf32> to vector<1x128xf32>
    %c0_6 = arith.constant 0 : index
    %c0_7 = arith.constant 0 : index
    %c0_8 = arith.constant 0 : index
    %7 = vector.load %arg5[%c0_6, %c0_7, %c0_8] : memref<1x2x128xf32, #tpu.memory_space<vmem>>, vector<1x1x128xf32>
    %8 = vector.shape_cast %7 : vector<1x1x128xf32> to vector<1x128xf32>
    %9 = vector.shape_cast %6 : vector<1x128xf32> to vector<1x1x128xf32>
    tpu.vector_store %arg5[%c0_6, %c0_7, %c0_8], %9 {strides = array<i32>} : memref<1x2x128xf32, #tpu.memory_space<vmem>>, vector<1x1x128xf32>,
    %10 = arith.mulf %2, %2 : vector<32x128xf32>
    %cst_9 = arith.constant dense<0.000000e+00> : vector<128xf32>
    %11 = vector.multi_reduction <add>, %10, %cst_9 [0] : vector<32x128xf32> to vector<128xf32>
    %12 = vector.shape_cast %11 : vector<128xf32> to vector<1x128xf32>
    %c0_10 = arith.constant 0 : index
    %c1 = arith.constant 1 : index
    %c0_11 = arith.constant 0 : index
    %13 = vector.load %arg5[%c0_10, %c1, %c0_11] : memref<1x2x128xf32, #tpu.memory_space<vmem>>, vector<1x1x128xf32>
    %14 = vector.shape_cast %13 : vector<1x1x128xf32> to vector<1x128xf32>
    %15 = vector.shape_cast %12 : vector<1x128xf32> to vector<1x1x128xf32>
    tpu.vector_store %arg5[%c0_10, %c1, %c0_11], %15 {strides = array<i32>} : memref<1x2x128xf32, #tpu.memory_space<vmem>>, vector<1x1x128xf32>,
    return
  }
  func.func @transform_0(%arg0: i32, %arg1: i32) -> (i32, i32) {
    %c0_i32 = arith.constant 0 : i32
    %c0_i32_0 = arith.constant 0 : i32
    return %arg0, %c0_i32 : i32, i32
  }
  func.func @transform_1(%arg0: i32, %arg1: i32) -> (i32, i32) {
    %c0_i32 = arith.constant 0 : i32
    %c0_i32_0 = arith.constant 0 : i32
    return %c0_i32, %arg1 : i32, i32
  }
  func.func @transform_2(%arg0: i32, %arg1: i32) -> (i32, i32) {
    %c0_i32 = arith.constant 0 : i32
    return %arg0, %arg1 : i32, i32
  }
  func.func @transform_3(%arg0: i32, %arg1: i32) -> (i32, i32, i32) {
    %c0_i32 = arith.constant 0 : i32
    %c0_i32_0 = arith.constant 0 : i32
    return %arg0, %c0_i32, %arg1 : i32, i32, i32
  }
}

module attributes {stable_mosaic.version = 11 : i64} {
  func.func @_matmul_fused_kernel(%arg0: i32, %arg1: i32, %arg2: memref<16x1024xbf16, #tpu.memory_space<vmem>>, %arg3: memref<1024x128xbf16, #tpu.memory_space<vmem>>, %arg4: memref<1x128xf32, #tpu.memory_space<vmem>>, %arg5: memref<16x128xf32, #tpu.memory_space<vmem>>) attributes {dimension_semantics = [#tpu.dimension_semantics<parallel>, #tpu.dimension_semantics<parallel>], iteration_bounds = array<i64: 1, 1>, scalar_prefetch = 0 : i64, scratch_operands = 0 : i64, tpu.core_type = #tpu.core_type<tc>, window_params = [{transform_indices = @transform_0, window_bounds = array<i64: 16, 1024>}, {transform_indices = @transform_1, window_bounds = array<i64: 1024, 128>}, {transform_indices = @transform_2, window_bounds = array<i64: 1, 128>}, {transform_indices = @transform_3, window_bounds = array<i64: 16, 128>}]} {
    %c0 = arith.constant 0 : index
    %c0_0 = arith.constant 0 : index
    %0 = vector.load %arg2[%c0, %c0_0] : memref<16x1024xbf16, #tpu.memory_space<vmem>>, vector<16x1024xbf16>
    %c0_1 = arith.constant 0 : index
    %c0_2 = arith.constant 0 : index
    %1 = vector.load %arg3[%c0_1, %c0_2] : memref<1024x128xbf16, #tpu.memory_space<vmem>>, vector<1024x128xbf16>
    %cst = arith.constant dense<0.000000e+00> : vector<16x128xf32>
    %2 = tpu.matmul %0, %1, %cst {dimension_numbers = #tpu.dot_dimension_numbers<[1], [0], [0], [1], [0, 0, 1, 1], [], []>} : vector<16x1024xbf16>, vector<1024x128xbf16>, vector<16x128xf32> -> vector<16x128xf32>
    %c0_3 = arith.constant 0 : index
    %c0_4 = arith.constant 0 : index
    %3 = vector.load %arg4[%c0_3, %c0_4] : memref<1x128xf32, #tpu.memory_space<vmem>>, vector<1x128xf32>
    %4 = vector.broadcast %3 : vector<1x128xf32> to vector<16x128xf32>
    %5 = arith.addf %2, %4 : vector<16x128xf32>
    %c0_5 = arith.constant 0 : index
    %c0_6 = arith.constant 0 : index
    %6 = vector.load %arg5[%c0_5, %c0_6] : memref<16x128xf32, #tpu.memory_space<vmem>>, vector<16x128xf32>
    tpu.vector_store %arg5[%c0_5, %c0_6], %5 {strides = array<i32>} : memref<16x128xf32, #tpu.memory_space<vmem>>, vector<16x128xf32>,
    return
  }
  func.func @transform_0(%arg0: i32, %arg1: i32) -> (i32, i32) {
    %c0_i32 = arith.constant 0 : i32
    %c0_i32_0 = arith.constant 0 : i32
    return %arg0, %c0_i32 : i32, i32
  }
  func.func @transform_1(%arg0: i32, %arg1: i32) -> (i32, i32) {
    %c0_i32 = arith.constant 0 : i32
    %c0_i32_0 = arith.constant 0 : i32
    return %c0_i32, %arg1 : i32, i32
  }
  func.func @transform_2(%arg0: i32, %arg1: i32) -> (i32, i32) {
    %c0_i32 = arith.constant 0 : i32
    %c0_i32_0 = arith.constant 0 : i32
    return %c0_i32, %arg1 : i32, i32
  }
  func.func @transform_3(%arg0: i32, %arg1: i32) -> (i32, i32) {
    %c0_i32 = arith.constant 0 : i32
    return %arg0, %arg1 : i32, i32
  }
}

</mosaic_0001>

<bundles_post_ra>
// kernel: _lambda_.5
= control target key start
LH: loop header
LB: loop body
LE: loop exit
PB: predicated region body
PF: predicated region fallthrough
CT: control target
= control target key end

     0   :  { %vm270_vm0 = vcmask 392192   ;;  %s1963_s1 = inlined_call_operand.vmem [shape: bf16[48,128], index: 1, kind: input, shape index: {}]   ;;  %s1964_s0 = inlined_call_operand.vmem [shape: bf16[512,48], index: 0, kind: input, shape index: {}]   ;;  %s1965_s2 = inlined_call_operand.vmem [shape: f32[1,128], index: 2, kind: input, shape index: {}]   ;;  %s1966_s3 = inlined_call_operand.vmem [shape: bf16[512,128], index: 3, kind: output, shape index: {}]  }
   0x1   :  { %v1606_v0 = vld [vmem:[%s1963_s1] sm:$0xff]   ;;  %v1607_v1 = vld [vmem:[%s1963_s1 + $0x8] sm:$0xff]   ;;  %v1608_v2 = vld [vmem:[%s1963_s1 + $0x10] sm:$0xff]  }
   0x2   :  { %1530 = vmatprep.subr.bf16.mxu0 %v1606_v0  ;;  %1600 = vmatprep.subr.bf16.mxu1 %v1606_v0  ;;  %v1609_v3 = vld [vmem:[%s1964_s0] sm:$0xff]   ;;  %v1611_v5 = vld [vmem:[%s1964_s0 + $0x8] sm:$0xff]   ;;  %v1613_v7 = vld [vmem:[%s1964_s0 + $0x10] sm:$0xff]  }
   0x3   :  { %1531 = vmatpush3.bf16.msra.mxu0 %v1606_v0  ;;  %1603 = vmatpush3.bf16.msra.mxu1 %v1606_v0  ;;  %v1610_v4 = vld [vmem:[%s1964_s0 + $0x80] sm:$0xff]   ;;  %v1612_v6 = vld [vmem:[%s1964_s0 + $0x88] sm:$0xff]   ;;  %v1614_v8 = vld [vmem:[%s1964_s0 + $0x90] sm:$0xff]  }
   0x4   :  { %1532 = vmatprep.subr.bf16.mxu0 %v1607_v1  ;;  %1601 = vmatprep.subr.bf16.mxu1 %v1607_v1  ;;  %v1615_v9 = vld [vmem:[%s1964_s0 + $0x18] sm:$0xff]   ;;  %v1617_v11 = vld [vmem:[%s1964_s0 + $0x20] sm:$0xff]   ;;  %v1619_v13 = vld [vmem:[%s1964_s0 + $0x28] sm:$0xff]  }
   0x5   :  { %1536 = vmatprep.mubr.msk.bf16.mxu0 %vm270_vm0, %v1609_v3  ;;  %1568 = vmatprep.mubr.msk.bf16.mxu1 %vm270_vm0, %v1610_v4  ;;  %v1616_v10 = vld [vmem:[%s1964_s0 + $0x98] sm:$0xff]   ;;  %v1618_v12 = vld [vmem:[%s1964_s0 + $0xa0] sm:$0xff]   ;;  %v1620_v14 = vld [vmem:[%s1964_s0 + $0xa8] sm:$0xff]  }
   0x6   :  { %v1621_v15 = vld [vmem:[%s1964_s0 + $0x30] sm:$0xff]   ;;  %v1623_v17 = vld [vmem:[%s1964_s0 + $0x38] sm:$0xff]   ;;  %v1625_v19 = vld [vmem:[%s1964_s0 + $0x40] sm:$0xff]  }
   0x7   :  { %1533 = vmatpush3.bf16.msra.mxu0 %v1607_v1  ;;  %1604 = vmatpush3.bf16.msra.mxu1 %v1607_v1  ;;  %v1622_v16 = vld [vmem:[%s1964_s0 + $0xb0] sm:$0xff]   ;;  %v1624_v18 = vld [vmem:[%s1964_s0 + $0xb8] sm:$0xff]   ;;  %v1626_v20 = vld [vmem:[%s1964_s0 + $0xc0] sm:$0xff]  }
   0x8   :  { %1534 = vmatprep.subr.bf16.mxu0 %v1608_v2  ;;  %1602 = vmatprep.subr.bf16.mxu1 %v1608_v2  ;;  %v1627_v21 = vld [vmem:[%s1964_s0 + $0x48] sm:$0xff]   ;;  %v1629_v23 = vld [vmem:[%s1964_s0 + $0x50] sm:$0xff]   ;;  %v1631_v25 = vld [vmem:[%s1964_s0 + $0x58] sm:$0xff]  }
   0x9   :  { %v1628_v22 = vld [vmem:[%s1964_s0 + $0xc8] sm:$0xff]   ;;  %v1630_v24 = vld [vmem:[%s1964_s0 + $0xd0] sm:$0xff]   ;;  %v1632_v26 = vld [vmem:[%s1964_s0 + $0xd8] sm:$0xff]  }
   0xa   :  { %v1633_v27 = vld [vmem:[%s1964_s0 + $0x60] sm:$0xff]   ;;  %v1635_v29 = vld [vmem:[%s1964_s0 + $0x68] sm:$0xff]   ;;  %v1637_v31 = vld [vmem:[%s1964_s0 + $0x70] sm:$0xff]  }
   0xb   :  { %1535 = vmatpush3.bf16.msra.mxu0 %v1608_v2  ;;  %1605 = vmatpush3.bf16.msra.mxu1 %v1608_v2  ;;  %v1634_v28 = vld [vmem:[%s1964_s0 + $0xe0] sm:$0xff]   ;;  %v1636_v30 = vld [vmem:[%s1964_s0 + $0xe8] sm:$0xff]   ;;  %v1638_v32 = vld [vmem:[%s1964_s0 + $0xf0] sm:$0xff]  }
   0xc   :  { %v1639_v33 = vld [vmem:[%s1964_s0 + $0x78] sm:$0xff]   ;;  %v1801_v35 = vld [vmem:[%s1965_s2] ss:$0 sm:$0xff] }
   0xd   :  { %v1640_v34 = vld [vmem:[%s1964_s0 + $0xf8] sm:$0xff]  }
   0xe   :  { %1537 = vmatmul.mubr.msk.bf16.vlgmr.msra.gmra.mrb[0].mxu0 %vm270_vm0, %v1611_v5  ;;  %1569 = vmatmul.mubr.msk.bf16.vlgmr.msra.gmra.mrb[0].mxu1 %vm270_vm0, %v1612_v6 }
   0xf   :  { %1540 = vmatprep.mubr.msk.bf16.mxu0 %vm270_vm0, %v1613_v7  ;;  %1572 = vmatprep.mubr.msk.bf16.mxu1 %vm270_vm0, %v1614_v8 }
  0x16   :  { %1541 = vmatmul.mubr.msk.bf16.gmra.mrb[4].mxu0 %vm270_vm0, %v1615_v9  ;;  %1573 = vmatmul.mubr.msk.bf16.gmra.mrb[4].mxu1 %vm270_vm0, %v1616_v10 }
  0x17   :  { %1544 = vmatprep.mubr.msk.bf16.mxu0 %vm270_vm0, %v1617_v11  ;;  %1576 = vmatprep.mubr.msk.bf16.mxu1 %vm270_vm0, %v1618_v12 }
  0x1e   :  { %1545 = vmatmul.mubr.msk.bf16.gmra.mrb[8].mxu0 %vm270_vm0, %v1619_v13  ;;  %1577 = vmatmul.mubr.msk.bf16.gmra.mrb[8].mxu1 %vm270_vm0, %v1620_v14 }
  0x1f   :  { %1548 = vmatprep.mubr.msk.bf16.mxu0 %vm270_vm0, %v1621_v15  ;;  %1580 = vmatprep.mubr.msk.bf16.mxu1 %vm270_vm0, %v1622_v16 }
  0x26   :  { %1549 = vmatmul.mubr.msk.bf16.gmra.mrb[12].mxu0 %vm270_vm0, %v1623_v17  ;;  %1581 = vmatmul.mubr.msk.bf16.gmra.mrb[12].mxu1 %vm270_vm0, %v1624_v18 }
  0x27   :  { %1552 = vmatprep.mubr.msk.bf16.mxu0 %vm270_vm0, %v1625_v19  ;;  %1584 = vmatprep.mubr.msk.bf16.mxu1 %vm270_vm0, %v1626_v20 }
  0x2e   :  { %1553 = vmatmul.mubr.msk.bf16.gmra.mrb[16].mxu0 %vm270_vm0, %v1627_v21  ;;  %1585 = vmatmul.mubr.msk.bf16.gmra.mrb[16].mxu1 %vm270_vm0, %v1628_v22 }
  0x2f   :  { %1556 = vmatprep.mubr.msk.bf16.mxu0 %vm270_vm0, %v1629_v23  ;;  %1588 = vmatprep.mubr.msk.bf16.mxu1 %vm270_vm0, %v1630_v24 }
  0x36   :  { %1557 = vmatmul.mubr.msk.bf16.gmra.mrb[20].mxu0 %vm270_vm0, %v1631_v25  ;;  %1589 = vmatmul.mubr.msk.bf16.gmra.mrb[20].mxu1 %vm270_vm0, %v1632_v26 }
  0x37   :  { %1560 = vmatprep.mubr.msk.bf16.mxu0 %vm270_vm0, %v1633_v27  ;;  %1592 = vmatprep.mubr.msk.bf16.mxu1 %vm270_vm0, %v1634_v28 }
  0x3e   :  { %1561 = vmatmul.mubr.msk.bf16.gmra.mrb[24].mxu0 %vm270_vm0, %v1635_v29  ;;  %1593 = vmatmul.mubr.msk.bf16.gmra.mrb[24].mxu1 %vm270_vm0, %v1636_v30 }
  0x3f   :  { %1564 = vmatprep.mubr.msk.bf16.mxu0 %vm270_vm0, %v1637_v31  ;;  %1596 = vmatprep.mubr.msk.bf16.mxu1 %vm270_vm0, %v1638_v32 }
  0x46   :  { %1565 = vmatmul.mubr.msk.bf16.gmra.mrb[28].mxu0 %vm270_vm0, %v1639_v33  ;;  %1597 = vmatmul.mubr.msk.bf16.gmra.mrb[28].mxu1 %vm270_vm0, %v1640_v34 }
  0xe1   :  { %v1538_v36 = vpop.f32.mrb[0].mxu0  ;;  %v1570_v37 = vpop.f32.mrb[0].mxu1 }
  0xe2   :  { %v410_v38 = vadd.f32 %v1538_v36, %v1801_v35  ;;  %v538_v39 = vadd.f32 %v1570_v37, %v1801_v35  ;;  %v401_v40 = vpop.f32.mrb[1].mxu0  ;;  %v529_v41 = vpop.f32.mrb[1].mxu1 }
  0xe3   :  { %v402_v42 = vadd.f32 %v1801_v35, %v401_v40  ;;  %v530_v43 = vadd.f32 %v1801_v35, %v529_v41  ;;  %v1539_v44 = vpop.f32.mrb[2].mxu0  ;;  %v1571_v45 = vpop.f32.mrb[2].mxu1 }
  0xe4   :  { %v658_v46 = vmul.f32 0.2, %v410_v38  ;;  %v690_v47 = vmul.f32 0.2, %v538_v39  ;;  %v413_v48 = vadd.f32 %v1539_v44, %v1801_v35  ;;  %v541_v49 = vadd.f32 %v1571_v45, %v1801_v35  ;;  %v404_v50 = vpop.f32.mrb[3].mxu0  ;;  %v532_v51 = vpop.f32.mrb[3].mxu1 }
  0xe5   :  { %v656_v52 = vmul.f32 0.2, %v402_v42  ;;  %v688_v53 = vmul.f32 0.2, %v530_v43  ;;  %v405_v54 = vadd.f32 %v1801_v35, %v404_v50  ;;  %v533_v55 = vadd.f32 %v1801_v35, %v532_v51 }
  0xe6   :  { %v659_v56 = vmul.f32 0.2, %v413_v48  ;;  %v691_v57 = vmul.f32 0.2, %v541_v49  ;;  %v722_v60 = vmax.f32 %v410_v38, %v658_v46  ;;  %v754_v61 = vmax.f32 %v538_v39, %v690_v47 }
  0xe7   :  { %v657_v58 = vmul.f32 0.2, %v405_v54  ;;  %v689_v59 = vmul.f32 0.2, %v533_v55  ;;  %v720_v0 = vmax.f32 %v402_v42, %v656_v52  ;;  %v752_v1 = vmax.f32 %v530_v43, %v688_v53 }
  0xe8   :  { %v723_v62 = vmax.f32 %v413_v48, %v659_v56  ;;  %v755_v63 = vmax.f32 %v541_v49, %v691_v57 }
  0xe9   :  { %v721_v2 = vmax.f32 %v405_v54, %v657_v58  ;;  %v753_v3 = vmax.f32 %v533_v55, %v689_v59  ;;  %v1542_v4 = vpop.f32.mrb[4].mxu0  ;;  %v1574_v5 = vpop.f32.mrb[4].mxu1 }
  0xea   :  { %v1312_v6 = vpack.c.bf16 %v723_v62, %v722_v60  ;;  %v1392_v7 = vpack.c.bf16 %v755_v63, %v754_v61  ;;  %v426_v8 = vadd.f32 %v1542_v4, %v1801_v35  ;;  %v554_v9 = vadd.f32 %v1574_v5, %v1801_v35  ;;  %v417_v10 = vpop.f32.mrb[5].mxu0  ;;  %v545_v11 = vpop.f32.mrb[5].mxu1 }
  0xeb   :  { %v1307_v12 = vpack.c.bf16 %v721_v2, %v720_v0  ;;  %v1387_v13 = vpack.c.bf16 %v753_v3, %v752_v1  ;;  %v418_v14 = vadd.f32 %v1801_v35, %v417_v10  ;;  %v546_v15 = vadd.f32 %v1801_v35, %v545_v11  ;;  %v1543_v16 = vpop.f32.mrb[6].mxu0  ;;  %v1575_v17 = vpop.f32.mrb[6].mxu1 }
  0xec   :  { %1464 = vst [vmem:[%s1966_s3 + $0x8] sm:$0xff] %v1312_v6   ;;  %1480 = vst [vmem:[%s1966_s3 + $0x88] sm:$0xff] %v1392_v7   ;;  %v662_v18 = vmul.f32 0.2, %v426_v8  ;;  %v694_v19 = vmul.f32 0.2, %v554_v9  ;;  %v429_v20 = vadd.f32 %v1543_v16, %v1801_v35  ;;  %v557_v21 = vadd.f32 %v1575_v17, %v1801_v35 }
  0xed   :  { %v420_v22 = vpop.f32.mrb[7].mxu0  ;;  %v548_v23 = vpop.f32.mrb[7].mxu1  ;;  %1308 = vst [vmem:[%s1966_s3] sm:$0xff] %v1307_v12   ;;  %1479 = vst [vmem:[%s1966_s3 + $0x80] sm:$0xff] %v1387_v13   ;;  %v660_v24 = vmul.f32 0.2, %v418_v14 }
  0xee   :  { %v692_v25 = vmul.f32 0.2, %v546_v15  ;;  %v421_v26 = vadd.f32 %v1801_v35, %v420_v22  ;;  %v549_v27 = vadd.f32 %v1801_v35, %v548_v23  ;;  %v663_v28 = vmul.f32 0.2, %v429_v20 }
  0xef   :  { %v695_v29 = vmul.f32 0.2, %v557_v21  ;;  %v726_v32 = vmax.f32 %v426_v8, %v662_v18  ;;  %v758_v33 = vmax.f32 %v554_v9, %v694_v19  ;;  %v724_v37 = vmax.f32 %v418_v14, %v660_v24 }
  0xf0   :  { %v661_v30 = vmul.f32 0.2, %v421_v26  ;;  %v693_v31 = vmul.f32 0.2, %v549_v27  ;;  %v727_v34 = vmax.f32 %v429_v20, %v663_v28  ;;  %v756_v38 = vmax.f32 %v546_v15, %v692_v25 }
  0xf1   :  { %v759_v36 = vmax.f32 %v557_v21, %v695_v29  ;;  %v1546_v41 = vpop.f32.mrb[8].mxu0  ;;  %v1578_v42 = vpop.f32.mrb[8].mxu1 }
  0xf2   :  { %v725_v39 = vmax.f32 %v421_v26, %v661_v30  ;;  %v757_v40 = vmax.f32 %v549_v27, %v693_v31  ;;  %v1322_v43 = vpack.c.bf16 %v727_v34, %v726_v32  ;;  %v442_v45 = vadd.f32 %v1546_v41, %v1801_v35  ;;  %v433_v47 = vpop.f32.mrb[9].mxu0  ;;  %v561_v48 = vpop.f32.mrb[9].mxu1 }
  0xf3   :  { %v1402_v44 = vpack.c.bf16 %v759_v36, %v758_v33  ;;  %v570_v46 = vadd.f32 %v1578_v42, %v1801_v35  ;;  %v434_v51 = vadd.f32 %v1801_v35, %v433_v47  ;;  %v562_v52 = vadd.f32 %v1801_v35, %v561_v48  ;;  %v1547_v53 = vpop.f32.mrb[10].mxu0  ;;  %v1579_v54 = vpop.f32.mrb[10].mxu1 }
  0xf4   :  { %v1317_v49 = vpack.c.bf16 %v725_v39, %v724_v37  ;;  %v1397_v50 = vpack.c.bf16 %v757_v40, %v756_v38  ;;  %1466 = vst [vmem:[%s1966_s3 + $0x18] sm:$0xff] %v1322_v43   ;;  %v666_v55 = vmul.f32 0.2, %v442_v45  ;;  %v445_v57 = vadd.f32 %v1547_v53, %v1801_v35  ;;  %v436_v59 = vpop.f32.mrb[11].mxu0  ;;  %v564_v60 = vpop.f32.mrb[11].mxu1 }
  0xf5   :  { %1482 = vst [vmem:[%s1966_s3 + $0x98] sm:$0xff] %v1402_v44   ;;  %v698_v56 = vmul.f32 0.2, %v570_v46  ;;  %v573_v58 = vadd.f32 %v1579_v54, %v1801_v35  ;;  %v664_v61 = vmul.f32 0.2, %v434_v51  ;;  %v437_v63 = vadd.f32 %v1801_v35, %v436_v59 }
  0xf6   :  { %1465 = vst [vmem:[%s1966_s3 + $0x10] sm:$0xff] %v1317_v49   ;;  %1481 = vst [vmem:[%s1966_s3 + $0x90] sm:$0xff] %v1397_v50   ;;  %v696_v62 = vmul.f32 0.2, %v562_v52  ;;  %v565_v0 = vadd.f32 %v1801_v35, %v564_v60  ;;  %v667_v1 = vmul.f32 0.2, %v445_v57  ;;  %v730_v5 = vmax.f32 %v442_v45, %v666_v55 }
  0xf7   :  { %v699_v2 = vmul.f32 0.2, %v573_v58  ;;  %v665_v3 = vmul.f32 0.2, %v437_v63  ;;  %v762_v6 = vmax.f32 %v570_v46, %v698_v56  ;;  %v728_v9 = vmax.f32 %v434_v51, %v664_v61 }
  0xf8   :  { %v697_v4 = vmul.f32 0.2, %v565_v0  ;;  %v731_v7 = vmax.f32 %v445_v57, %v667_v1  ;;  %v760_v10 = vmax.f32 %v562_v52, %v696_v62 }
  0xf9   :  { %v763_v8 = vmax.f32 %v573_v58, %v699_v2  ;;  %v729_v11 = vmax.f32 %v437_v63, %v665_v3  ;;  %v1550_v13 = vpop.f32.mrb[12].mxu0  ;;  %v1582_v14 = vpop.f32.mrb[12].mxu1 }
  0xfa   :  { %v761_v12 = vmax.f32 %v565_v0, %v697_v4  ;;  %v1332_v15 = vpack.c.bf16 %v731_v7, %v730_v5  ;;  %v458_v17 = vadd.f32 %v1550_v13, %v1801_v35  ;;  %v586_v18 = vadd.f32 %v1582_v14, %v1801_v35  ;;  %v449_v19 = vpop.f32.mrb[13].mxu0  ;;  %v577_v20 = vpop.f32.mrb[13].mxu1 }
  0xfb   :  { %v1412_v16 = vpack.c.bf16 %v763_v8, %v762_v6  ;;  %v1327_v21 = vpack.c.bf16 %v729_v11, %v728_v9  ;;  %v450_v23 = vadd.f32 %v1801_v35, %v449_v19  ;;  %v578_v24 = vadd.f32 %v1801_v35, %v577_v20  ;;  %v1551_v25 = vpop.f32.mrb[14].mxu0  ;;  %v1583_v26 = vpop.f32.mrb[14].mxu1 }
  0xfc   :  { %v1407_v22 = vpack.c.bf16 %v761_v12, %v760_v10  ;;  %1468 = vst [vmem:[%s1966_s3 + $0x28] sm:$0xff] %v1332_v15   ;;  %v670_v27 = vmul.f32 0.2, %v458_v17  ;;  %v702_v28 = vmul.f32 0.2, %v586_v18  ;;  %v461_v29 = vadd.f32 %v1551_v25, %v1801_v35  ;;  %v452_v31 = vpop.f32.mrb[15].mxu0 }
  0xfd   :  { %1484 = vst [vmem:[%s1966_s3 + $0xa8] sm:$0xff] %v1412_v16   ;;  %v589_v30 = vadd.f32 %v1583_v26, %v1801_v35  ;;  %v580_v32 = vpop.f32.mrb[15].mxu1  ;;  %1467 = vst [vmem:[%s1966_s3 + $0x20] sm:$0xff] %v1327_v21   ;;  %v668_v33 = vmul.f32 0.2, %v450_v23  ;;  %v453_v36 = vadd.f32 %v1801_v35, %v452_v31 }
  0xfe   :  { %1483 = vst [vmem:[%s1966_s3 + $0xa0] sm:$0xff] %v1407_v22   ;;  %v700_v34 = vmul.f32 0.2, %v578_v24  ;;  %v581_v37 = vadd.f32 %v1801_v35, %v580_v32  ;;  %v671_v38 = vmul.f32 0.2, %v461_v29  ;;  %v734_v42 = vmax.f32 %v458_v17, %v670_v27 }
  0xff   :  { %v703_v39 = vmul.f32 0.2, %v589_v30  ;;  %v669_v40 = vmul.f32 0.2, %v453_v36  ;;  %v766_v43 = vmax.f32 %v586_v18, %v702_v28  ;;  %v732_v46 = vmax.f32 %v450_v23, %v668_v33 }
 0x100   :  { %v701_v41 = vmul.f32 0.2, %v581_v37  ;;  %v735_v44 = vmax.f32 %v461_v29, %v671_v38  ;;  %v764_v47 = vmax.f32 %v578_v24, %v700_v34 }
 0x101   :  { %v767_v45 = vmax.f32 %v589_v30, %v703_v39  ;;  %v733_v48 = vmax.f32 %v453_v36, %v669_v40  ;;  %v1554_v50 = vpop.f32.mrb[16].mxu0  ;;  %v1586_v51 = vpop.f32.mrb[16].mxu1 }
 0x102   :  { %v765_v49 = vmax.f32 %v581_v37, %v701_v41  ;;  %v1342_v52 = vpack.c.bf16 %v735_v44, %v734_v42  ;;  %v474_v54 = vadd.f32 %v1554_v50, %v1801_v35  ;;  %v602_v55 = vadd.f32 %v1586_v51, %v1801_v35  ;;  %v465_v56 = vpop.f32.mrb[17].mxu0  ;;  %v593_v57 = vpop.f32.mrb[17].mxu1 }
 0x103   :  { %v1422_v53 = vpack.c.bf16 %v767_v45, %v766_v43  ;;  %v1337_v58 = vpack.c.bf16 %v733_v48, %v732_v46  ;;  %v466_v60 = vadd.f32 %v1801_v35, %v465_v56  ;;  %v594_v61 = vadd.f32 %v1801_v35, %v593_v57  ;;  %v1555_v62 = vpop.f32.mrb[18].mxu0  ;;  %v1587_v63 = vpop.f32.mrb[18].mxu1 }
 0x104   :  { %v1417_v59 = vpack.c.bf16 %v765_v49, %v764_v47  ;;  %1470 = vst [vmem:[%s1966_s3 + $0x38] sm:$0xff] %v1342_v52   ;;  %v674_v0 = vmul.f32 0.2, %v474_v54  ;;  %v706_v1 = vmul.f32 0.2, %v602_v55  ;;  %v477_v2 = vadd.f32 %v1555_v62, %v1801_v35  ;;  %v468_v4 = vpop.f32.mrb[19].mxu0 }
 0x105   :  { %1486 = vst [vmem:[%s1966_s3 + $0xb8] sm:$0xff] %v1422_v53   ;;  %v605_v3 = vadd.f32 %v1587_v63, %v1801_v35  ;;  %v596_v5 = vpop.f32.mrb[19].mxu1  ;;  %1469 = vst [vmem:[%s1966_s3 + $0x30] sm:$0xff] %v1337_v58   ;;  %v672_v6 = vmul.f32 0.2, %v466_v60  ;;  %v469_v8 = vadd.f32 %v1801_v35, %v468_v4 }
 0x106   :  { %1485 = vst [vmem:[%s1966_s3 + $0xb0] sm:$0xff] %v1417_v59   ;;  %v704_v7 = vmul.f32 0.2, %v594_v61  ;;  %v597_v9 = vadd.f32 %v1801_v35, %v596_v5  ;;  %v675_v10 = vmul.f32 0.2, %v477_v2  ;;  %v738_v14 = vmax.f32 %v474_v54, %v674_v0 }
 0x107   :  { %v707_v11 = vmul.f32 0.2, %v605_v3  ;;  %v673_v12 = vmul.f32 0.2, %v469_v8  ;;  %v770_v15 = vmax.f32 %v602_v55, %v706_v1  ;;  %v736_v18 = vmax.f32 %v466_v60, %v672_v6 }
 0x108   :  { %v705_v13 = vmul.f32 0.2, %v597_v9  ;;  %v739_v16 = vmax.f32 %v477_v2, %v675_v10  ;;  %v768_v19 = vmax.f32 %v594_v61, %v704_v7 }
 0x109   :  { %v771_v17 = vmax.f32 %v605_v3, %v707_v11  ;;  %v737_v20 = vmax.f32 %v469_v8, %v673_v12  ;;  %v1558_v22 = vpop.f32.mrb[20].mxu0  ;;  %v1590_v23 = vpop.f32.mrb[20].mxu1 }
 0x10a   :  { %v769_v21 = vmax.f32 %v597_v9, %v705_v13  ;;  %v1352_v24 = vpack.c.bf16 %v739_v16, %v738_v14  ;;  %v490_v26 = vadd.f32 %v1558_v22, %v1801_v35  ;;  %v618_v27 = vadd.f32 %v1590_v23, %v1801_v35  ;;  %v481_v28 = vpop.f32.mrb[21].mxu0  ;;  %v609_v29 = vpop.f32.mrb[21].mxu1 }
 0x10b   :  { %v1432_v25 = vpack.c.bf16 %v771_v17, %v770_v15  ;;  %v1347_v30 = vpack.c.bf16 %v737_v20, %v736_v18  ;;  %v482_v32 = vadd.f32 %v1801_v35, %v481_v28  ;;  %v610_v33 = vadd.f32 %v1801_v35, %v609_v29  ;;  %v1559_v34 = vpop.f32.mrb[22].mxu0  ;;  %v1591_v36 = vpop.f32.mrb[22].mxu1 }
 0x10c   :  { %v1427_v31 = vpack.c.bf16 %v769_v21, %v768_v19  ;;  %1472 = vst [vmem:[%s1966_s3 + $0x48] sm:$0xff] %v1352_v24   ;;  %v678_v37 = vmul.f32 0.2, %v490_v26  ;;  %v710_v38 = vmul.f32 0.2, %v618_v27  ;;  %v493_v39 = vadd.f32 %v1559_v34, %v1801_v35  ;;  %v484_v41 = vpop.f32.mrb[23].mxu0 }
 0x10d   :  { %1488 = vst [vmem:[%s1966_s3 + $0xc8] sm:$0xff] %v1432_v25   ;;  %v621_v40 = vadd.f32 %v1591_v36, %v1801_v35  ;;  %v612_v42 = vpop.f32.mrb[23].mxu1  ;;  %1471 = vst [vmem:[%s1966_s3 + $0x40] sm:$0xff] %v1347_v30   ;;  %v676_v43 = vmul.f32 0.2, %v482_v32  ;;  %v485_v45 = vadd.f32 %v1801_v35, %v484_v41 }
 0x10e   :  { %1487 = vst [vmem:[%s1966_s3 + $0xc0] sm:$0xff] %v1427_v31   ;;  %v708_v44 = vmul.f32 0.2, %v610_v33  ;;  %v613_v46 = vadd.f32 %v1801_v35, %v612_v42  ;;  %v679_v47 = vmul.f32 0.2, %v493_v39  ;;  %v742_v51 = vmax.f32 %v490_v26, %v678_v37 }
 0x10f   :  { %v711_v48 = vmul.f32 0.2, %v621_v40  ;;  %v677_v49 = vmul.f32 0.2, %v485_v45  ;;  %v774_v52 = vmax.f32 %v618_v27, %v710_v38  ;;  %v740_v55 = vmax.f32 %v482_v32, %v676_v43 }
 0x110   :  { %v709_v50 = vmul.f32 0.2, %v613_v46  ;;  %v743_v53 = vmax.f32 %v493_v39, %v679_v47  ;;  %v772_v56 = vmax.f32 %v610_v33, %v708_v44 }
 0x111   :  { %v775_v54 = vmax.f32 %v621_v40, %v711_v48  ;;  %v741_v57 = vmax.f32 %v485_v45, %v677_v49  ;;  %v1562_v59 = vpop.f32.mrb[24].mxu0  ;;  %v1594_v60 = vpop.f32.mrb[24].mxu1 }
 0x112   :  { %v773_v58 = vmax.f32 %v613_v46, %v709_v50  ;;  %v1362_v61 = vpack.c.bf16 %v743_v53, %v742_v51  ;;  %v506_v63 = vadd.f32 %v1562_v59, %v1801_v35  ;;  %v634_v0 = vadd.f32 %v1594_v60, %v1801_v35  ;;  %v497_v1 = vpop.f32.mrb[25].mxu0  ;;  %v625_v2 = vpop.f32.mrb[25].mxu1 }
 0x113   :  { %v1442_v62 = vpack.c.bf16 %v775_v54, %v774_v52  ;;  %v1357_v3 = vpack.c.bf16 %v741_v57, %v740_v55  ;;  %v498_v5 = vadd.f32 %v1801_v35, %v497_v1  ;;  %v626_v6 = vadd.f32 %v1801_v35, %v625_v2  ;;  %v1563_v7 = vpop.f32.mrb[26].mxu0  ;;  %v1595_v8 = vpop.f32.mrb[26].mxu1 }
 0x114   :  { %v1437_v4 = vpack.c.bf16 %v773_v58, %v772_v56  ;;  %1474 = vst [vmem:[%s1966_s3 + $0x58] sm:$0xff] %v1362_v61   ;;  %v682_v9 = vmul.f32 0.2, %v506_v63  ;;  %v714_v10 = vmul.f32 0.2, %v634_v0  ;;  %v509_v11 = vadd.f32 %v1563_v7, %v1801_v35  ;;  %v500_v13 = vpop.f32.mrb[27].mxu0 }
 0x115   :  { %1490 = vst [vmem:[%s1966_s3 + $0xd8] sm:$0xff] %v1442_v62   ;;  %v637_v12 = vadd.f32 %v1595_v8, %v1801_v35  ;;  %v628_v14 = vpop.f32.mrb[27].mxu1  ;;  %1473 = vst [vmem:[%s1966_s3 + $0x50] sm:$0xff] %v1357_v3   ;;  %v680_v15 = vmul.f32 0.2, %v498_v5  ;;  %v501_v17 = vadd.f32 %v1801_v35, %v500_v13 }
 0x116   :  { %1489 = vst [vmem:[%s1966_s3 + $0xd0] sm:$0xff] %v1437_v4   ;;  %v712_v16 = vmul.f32 0.2, %v626_v6  ;;  %v629_v18 = vadd.f32 %v1801_v35, %v628_v14  ;;  %v683_v19 = vmul.f32 0.2, %v509_v11  ;;  %v746_v23 = vmax.f32 %v506_v63, %v682_v9 }
 0x117   :  { %v715_v20 = vmul.f32 0.2, %v637_v12  ;;  %v681_v21 = vmul.f32 0.2, %v501_v17  ;;  %v778_v24 = vmax.f32 %v634_v0, %v714_v10  ;;  %v744_v27 = vmax.f32 %v498_v5, %v680_v15 }
 0x118   :  { %v713_v22 = vmul.f32 0.2, %v629_v18  ;;  %v747_v25 = vmax.f32 %v509_v11, %v683_v19  ;;  %v776_v28 = vmax.f32 %v626_v6, %v712_v16 }
 0x119   :  { %v779_v26 = vmax.f32 %v637_v12, %v715_v20  ;;  %v745_v29 = vmax.f32 %v501_v17, %v681_v21  ;;  %v1566_v31 = vpop.f32.mrb[28].mxu0  ;;  %v1598_v32 = vpop.f32.mrb[28].mxu1 }
 0x11a   :  { %v777_v30 = vmax.f32 %v629_v18, %v713_v22  ;;  %v1372_v33 = vpack.c.bf16 %v747_v25, %v746_v23  ;;  %v522_v36 = vadd.f32 %v1566_v31, %v1801_v35  ;;  %v650_v37 = vadd.f32 %v1598_v32, %v1801_v35  ;;  %v513_v38 = vpop.f32.mrb[29].mxu0  ;;  %v641_v39 = vpop.f32.mrb[29].mxu1 }
 0x11b   :  { %v1452_v34 = vpack.c.bf16 %v779_v26, %v778_v24  ;;  %v1367_v40 = vpack.c.bf16 %v745_v29, %v744_v27  ;;  %v514_v42 = vadd.f32 %v1801_v35, %v513_v38  ;;  %v642_v43 = vadd.f32 %v1801_v35, %v641_v39  ;;  %v1567_v44 = vpop.f32.mrb[30].mxu0  ;;  %v1599_v45 = vpop.f32.mrb[30].mxu1 }
 0x11c   :  { %v1447_v41 = vpack.c.bf16 %v777_v30, %v776_v28  ;;  %1476 = vst [vmem:[%s1966_s3 + $0x68] sm:$0xff] %v1372_v33   ;;  %v686_v46 = vmul.f32 0.2, %v522_v36  ;;  %v718_v47 = vmul.f32 0.2, %v650_v37  ;;  %v525_v48 = vadd.f32 %v1567_v44, %v1801_v35  ;;  %v516_v50 = vpop.f32.mrb[31].mxu0 }
 0x11d   :  { %1492 = vst [vmem:[%s1966_s3 + $0xe8] sm:$0xff] %v1452_v34   ;;  %v653_v49 = vadd.f32 %v1599_v45, %v1801_v35  ;;  %v644_v51 = vpop.f32.mrb[31].mxu1  ;;  %1475 = vst [vmem:[%s1966_s3 + $0x60] sm:$0xff] %v1367_v40   ;;  %v684_v52 = vmul.f32 0.2, %v514_v42  ;;  %v517_v54 = vadd.f32 %v1801_v35, %v516_v50 }
 0x11e   :  { %1491 = vst [vmem:[%s1966_s3 + $0xe0] sm:$0xff] %v1447_v41   ;;  %v716_v53 = vmul.f32 0.2, %v642_v43  ;;  %v645_v55 = vadd.f32 %v1801_v35, %v644_v51  ;;  %v687_v56 = vmul.f32 0.2, %v525_v48  ;;  %v750_v60 = vmax.f32 %v522_v36, %v686_v46 }
 0x11f   :  { %v719_v57 = vmul.f32 0.2, %v653_v49  ;;  %v685_v58 = vmul.f32 0.2, %v517_v54  ;;  %v782_v61 = vmax.f32 %v650_v37, %v718_v47  ;;  %v748_v0 = vmax.f32 %v514_v42, %v684_v52 }
 0x120   :  { %v717_v59 = vmul.f32 0.2, %v645_v55  ;;  %v751_v62 = vmax.f32 %v525_v48, %v687_v56  ;;  %v780_v1 = vmax.f32 %v642_v43, %v716_v53 }
 0x121   :  { %v783_v63 = vmax.f32 %v653_v49, %v719_v57  ;;  %v749_v2 = vmax.f32 %v517_v54, %v685_v58 }
 0x122   :  { %v781_v3 = vmax.f32 %v645_v55, %v717_v59  ;;  %v1382_v4 = vpack.c.bf16 %v751_v62, %v750_v60 }
 0x123   :  { %v1462_v5 = vpack.c.bf16 %v783_v63, %v782_v61  ;;  %v1377_v6 = vpack.c.bf16 %v749_v2, %v748_v0 }
 0x124   :  { %v1457_v7 = vpack.c.bf16 %v781_v3, %v780_v1  ;;  %1478 = vst [vmem:[%s1966_s3 + $0x78] sm:$0xff] %v1382_v4  }
 0x125   :  { %1494 = vst [vmem:[%s1966_s3 + $0xf8] sm:$0xff] %v1462_v5   ;;  %1477 = vst [vmem:[%s1966_s3 + $0x70] sm:$0xff] %v1377_v6  }
 0x126   :  { %1493 = vst [vmem:[%s1966_s3 + $0xf0] sm:$0xff] %v1457_v7  }

// kernel: _lambda_.6
= control target key start
LH: loop header
LB: loop body
LE: loop exit
PB: predicated region body
PF: predicated region fallthrough
CT: control target
= control target key end

     0   :  { %s660_s1 = inlined_call_operand.vmem [shape: bf16[128,128], index: 1, kind: input, shape index: {}]   ;;  %s661_s0 = inlined_call_operand.vmem [shape: bf16[128,128], index: 0, kind: input, shape index: {}]   ;;  %s662_s2 = inlined_call_operand.vmem [shape: bf16[128,128], index: 2, kind: output, shape index: {0}]   ;;  %s663_s3 = inlined_call_operand.vmem [shape: f32[1,2,128], index: 3, kind: output, shape index: {1}]  }
   0x1   :  { %v546_v0 = vld [vmem:[%s660_s1] sm:$0xff]   ;;  %v547_v1 = vld [vmem:[%s660_s1 + $0x8] sm:$0xff]   ;;  %v548_v2 = vld [vmem:[%s660_s1 + $0x10] sm:$0xff]  }
   0x2   :  { %498 = vmatprep.subr.bf16.mxu0 %v546_v0  ;;  %530 = vmatprep.subr.bf16.mxu1 %v546_v0  ;;  %v549_v3 = vld [vmem:[%s660_s1 + $0x18] sm:$0xff]   ;;  %v554_v4 = vld [vmem:[%s661_s0] sm:$0xff]   ;;  %v551_v7 = vld [vmem:[%s660_s1 + $0x28] sm:$0xff]  }
   0x3   :  { %499 = vmatpush3.bf16.msra.mxu0 %v546_v0  ;;  %538 = vmatpush3.bf16.msra.mxu1 %v546_v0  ;;  %v550_v5 = vld [vmem:[%s660_s1 + $0x20] sm:$0xff]   ;;  %v552_v8 = vld [vmem:[%s660_s1 + $0x30] sm:$0xff]   ;;  %v553_v9 = vld [vmem:[%s660_s1 + $0x38] sm:$0xff]  }
   0x4   :  { %500 = vmatprep.subr.bf16.mxu0 %v547_v1  ;;  %531 = vmatprep.subr.bf16.mxu1 %v547_v1  ;;  %v558_v6 = vld [vmem:[%s661_s0 + $0x20] sm:$0xff]   ;;  %v555_v10 = vld [vmem:[%s661_s0 + $0x8] sm:$0xff]   ;;  %v556_v12 = vld [vmem:[%s661_s0 + $0x10] sm:$0xff]  }
   0x5   :  { %514 = vmatprep.mubr.bf16.mxu0 %v554_v4  ;;  %522 = vmatprep.mubr.bf16.mxu1 %v558_v6  ;;  %v559_v11 = vld [vmem:[%s661_s0 + $0x28] sm:$0xff]   ;;  %v560_v13 = vld [vmem:[%s661_s0 + $0x30] sm:$0xff]   ;;  %v557_v14 = vld [vmem:[%s661_s0 + $0x18] sm:$0xff]  }
   0x6   :  { %v561_v15 = vld [vmem:[%s661_s0 + $0x38] sm:$0xff]  }
   0x7   :  { %501 = vmatpush3.bf16.msra.mxu0 %v547_v1  ;;  %539 = vmatpush3.bf16.msra.mxu1 %v547_v1 }
   0x8   :  { %502 = vmatprep.subr.bf16.mxu0 %v548_v2  ;;  %532 = vmatprep.subr.bf16.mxu1 %v548_v2 }
   0xb   :  { %503 = vmatpush3.bf16.msra.mxu0 %v548_v2  ;;  %540 = vmatpush3.bf16.msra.mxu1 %v548_v2 }
   0xc   :  { %504 = vmatprep.subr.bf16.mxu0 %v549_v3  ;;  %533 = vmatprep.subr.bf16.mxu1 %v549_v3 }
   0xf   :  { %505 = vmatpush3.bf16.msra.mxu0 %v549_v3  ;;  %541 = vmatpush3.bf16.msra.mxu1 %v549_v3 }
  0x10   :  { %506 = vmatprep.subr.bf16.mxu0 %v550_v5  ;;  %534 = vmatprep.subr.bf16.mxu1 %v550_v5 }
  0x13   :  { %507 = vmatpush3.bf16.msra.mxu0 %v550_v5  ;;  %542 = vmatpush3.bf16.msra.mxu1 %v550_v5 }
  0x14   :  { %508 = vmatprep.subr.bf16.mxu0 %v551_v7  ;;  %535 = vmatprep.subr.bf16.mxu1 %v551_v7 }
  0x17   :  { %509 = vmatpush3.bf16.msra.mxu0 %v551_v7  ;;  %543 = vmatpush3.bf16.msra.mxu1 %v551_v7 }
  0x18   :  { %510 = vmatprep.subr.bf16.mxu0 %v552_v8  ;;  %536 = vmatprep.subr.bf16.mxu1 %v552_v8 }
  0x1b   :  { %511 = vmatpush3.bf16.msra.mxu0 %v552_v8  ;;  %544 = vmatpush3.bf16.msra.mxu1 %v552_v8 }
  0x1c   :  { %512 = vmatprep.subr.bf16.mxu0 %v553_v9  ;;  %537 = vmatprep.subr.bf16.mxu1 %v553_v9 }
  0x1f   :  { %513 = vmatpush3.bf16.msra.mxu0 %v553_v9  ;;  %545 = vmatpush3.bf16.msra.mxu1 %v553_v9 }
  0x22   :  { %515 = vmatmul.mubr.bf16.vlgmr.msra.gmra.mrb[0].mxu0 %v555_v10  ;;  %523 = vmatmul.mubr.bf16.vlgmr.msra.gmra.mrb[0].mxu1 %v559_v11 }
  0x23   :  { %518 = vmatprep.mubr.bf16.mxu0 %v556_v12  ;;  %526 = vmatprep.mubr.bf16.mxu1 %v560_v13 }
  0x2a   :  { %519 = vmatmul.mubr.bf16.gmra.mrb[4].mxu0 %v557_v14  ;;  %527 = vmatmul.mubr.bf16.gmra.mrb[4].mxu1 %v561_v15 }
  0xf5   :  { %v516_v16 = vpop.f32.mrb[0].mxu0  ;;  %v524_v17 = vpop.f32.mrb[0].mxu1 }
  0xf6   :  { %v176_v18 = vpop.f32.mrb[1].mxu0  ;;  %v208_v19 = vpop.f32.mrb[1].mxu1  ;;  %v343_v31 = vmul.f32 %v516_v16, %v516_v16  ;;  %v351_v3 = vmul.f32 %v524_v17, %v524_v17 }
  0xf7   :  { %v517_v20 = vpop.f32.mrb[2].mxu0  ;;  %v525_v21 = vpop.f32.mrb[2].mxu1  ;;  %v341_v22 = vmul.f32 %v176_v18, %v176_v18  ;;  %v349_v61 = vmul.f32 %v208_v19, %v208_v19 }
  0xf8   :  { %v443_v23 = vpack.c.bf16 %v517_v20, %v516_v16  ;;  %v179_v24 = vpop.f32.mrb[3].mxu0  ;;  %v463_v25 = vpack.c.bf16 %v525_v21, %v524_v17  ;;  %v211_v26 = vpop.f32.mrb[3].mxu1  ;;  %v344_v34 = vmul.f32 %v517_v20, %v517_v20  ;;  %v352_v6 = vmul.f32 %v525_v21, %v525_v21 }
  0xf9   :  { %v438_v27 = vpack.c.bf16 %v179_v24, %v176_v18  ;;  %v319_v28 = vadd.f32 %v179_v24, %v176_v18  ;;  %v342_v29 = vmul.f32 %v179_v24, %v179_v24  ;;  %v458_v30 = vpack.c.bf16 %v211_v26, %v208_v19 }
  0xfa   :  { %475 = vst [vmem:[%s662_s2 + $0x8] sm:$0xff] %v443_v23   ;;  %479 = vst [vmem:[%s662_s2 + $0x28] sm:$0xff] %v463_v25   ;;  %v350_v2 = vmul.f32 %v211_v26, %v211_v26 }
  0xfb   :  { %439 = vst [vmem:[%s662_s2] sm:$0xff] %v438_v27   ;;  %v320_v32 = vadd.f32 %v516_v16, %v319_v28  ;;  %v357_v33 = vadd.f32 %v342_v29, %v341_v22  ;;  %478 = vst [vmem:[%s662_s2 + $0x20] sm:$0xff] %v458_v30  }
  0xfd   :  { %v358_v35 = vadd.f32 %v357_v33, %v343_v31  ;;  %v520_v36 = vpop.f32.mrb[4].mxu0  ;;  %v321_v37 = vadd.f32 %v517_v20, %v320_v32  ;;  %v528_v38 = vpop.f32.mrb[4].mxu1 }
  0xfe   :  { %v192_v39 = vpop.f32.mrb[5].mxu0  ;;  %v224_v40 = vpop.f32.mrb[5].mxu1  ;;  %v347_v55 = vmul.f32 %v520_v36, %v520_v36  ;;  %v355_v15 = vmul.f32 %v528_v38, %v528_v38 }
  0xff   :  { %v322_v41 = vadd.f32 %v321_v37, %v192_v39  ;;  %v345_v42 = vmul.f32 %v192_v39, %v192_v39  ;;  %v359_v43 = vadd.f32 %v358_v35, %v344_v34  ;;  %v521_v44 = vpop.f32.mrb[6].mxu0  ;;  %v529_v45 = vpop.f32.mrb[6].mxu1  ;;  %v353_v9 = vmul.f32 %v224_v40, %v224_v40 }
 0x100   :  { %v453_v46 = vpack.c.bf16 %v521_v44, %v520_v36  ;;  %v195_v47 = vpop.f32.mrb[7].mxu0  ;;  %v473_v48 = vpack.c.bf16 %v529_v45, %v528_v38  ;;  %v227_v49 = vpop.f32.mrb[7].mxu1  ;;  %v348_v58 = vmul.f32 %v521_v44, %v521_v44 }
 0x101   :  { %v360_v50 = vadd.f32 %v359_v43, %v345_v42  ;;  %v448_v51 = vpack.c.bf16 %v195_v47, %v192_v39  ;;  %v323_v52 = vadd.f32 %v322_v41, %v195_v47  ;;  %v346_v53 = vmul.f32 %v195_v47, %v195_v47 }
 0x102   :  { %477 = vst [vmem:[%s662_s2 + $0x18] sm:$0xff] %v453_v46   ;;  %481 = vst [vmem:[%s662_s2 + $0x38] sm:$0xff] %v473_v48   ;;  %v468_v54 = vpack.c.bf16 %v227_v49, %v224_v40  ;;  %v354_v14 = vmul.f32 %v227_v49, %v227_v49 }
 0x103   :  { %476 = vst [vmem:[%s662_s2 + $0x10] sm:$0xff] %v448_v51   ;;  %v324_v56 = vadd.f32 %v520_v36, %v323_v52  ;;  %v361_v57 = vadd.f32 %v360_v50, %v346_v53 }
 0x104   :  { %480 = vst [vmem:[%s662_s2 + $0x30] sm:$0xff] %v468_v54  }
 0x105   :  { %v362_v59 = vadd.f32 %v361_v57, %v347_v55  ;;  %v325_v60 = vadd.f32 %v521_v44, %v324_v56 }
 0x107   :  { %v326_v62 = vadd.f32 %v325_v60, %v208_v19  ;;  %v363_v63 = vadd.f32 %v362_v59, %v348_v58  ;;  %v356_v19 = vmul.f32 %v529_v45, %v529_v45 }
 0x109   :  { %v364_v0 = vadd.f32 %v363_v63, %v349_v61  ;;  %v327_v1 = vadd.f32 %v326_v62, %v211_v26 }
 0x10b   :  { %v328_v4 = vadd.f32 %v524_v17, %v327_v1  ;;  %v365_v5 = vadd.f32 %v364_v0, %v350_v2 }
 0x10d   :  { %v366_v7 = vadd.f32 %v365_v5, %v351_v3  ;;  %v329_v8 = vadd.f32 %v525_v21, %v328_v4 }
 0x10f   :  { %v330_v10 = vadd.f32 %v329_v8, %v224_v40  ;;  %v367_v11 = vadd.f32 %v366_v7, %v352_v6 }
 0x111   :  { %v368_v12 = vadd.f32 %v367_v11, %v353_v9  ;;  %v331_v13 = vadd.f32 %v330_v10, %v227_v49 }
 0x113   :  { %v332_v16 = vadd.f32 %v528_v38, %v331_v13  ;;  %v369_v18 = vadd.f32 %v368_v12, %v354_v14 }
 0x115   :  { %v333_v20 = vadd.f32 %v529_v45, %v332_v16  ;;  %v370_v22 = vadd.f32 %v369_v18, %v355_v15 }
 0x117   :  { %v334_v23 = vrot.slane %v333_v20, 4  ;;  %v371_v24 = vadd.f32 %v370_v22, %v356_v19 }
 0x119   :  { %v335_v25 = vadd.f32 %v334_v23, %v333_v20  ;;  %v372_v17 = vrot.slane %v371_v24, 4 }
 0x11b   :  { %v336_v26 = vrot.slane %v335_v25, 2  ;;  %v373_v27 = vadd.f32 %v372_v17, %v371_v24 }
 0x11d   :  { %v337_v28 = vadd.f32 %v336_v26, %v335_v25  ;;  %v374_v21 = vrot.slane %v373_v27, 2 }
 0x11f   :  { %v338_v29 = vrot.slane %v337_v28, 1  ;;  %v375_v30 = vadd.f32 %v374_v21, %v373_v27 }
 0x121   :  { %v339_v31 = vadd.f32 %v338_v29, %v337_v28  ;;  %v376_v32 = vrot.slane %v375_v30, 1 }
 0x123   :  { %340 = vst [vmem:[%s663_s3] sm:$0x1] %v339_v31  ;;  %v377_v33 = vadd.f32 %v376_v32, %v375_v30 }
 0x125   :  { %378 = vst [vmem:[%s663_s3 + $0x1] sm:$0x1] %v377_v33 }

// kernel: _lambda_.7
= control target key start
LH: loop header
LB: loop body
LE: loop exit
PB: predicated region body
PF: predicated region fallthrough
CT: control target
= control target key end

     0   :  { %s464_s1 = inlined_call_operand.vmem [shape: bf16[256,128], index: 1, kind: input, shape index: {}]   ;;  %s465_s0 = inlined_call_operand.vmem [shape: bf16[32,256], index: 0, kind: input, shape index: {}]   ;;  %s466_s2 = inlined_call_operand.vmem [shape: bf16[32,128], index: 2, kind: output, shape index: {0}]   ;;  %s467_s3 = inlined_call_operand.vmem [shape: f32[1,2,128], index: 3, kind: output, shape index: {1}]  }
   0x1   :  { %v350_v0 = vld [vmem:[%s464_s1 + $0x40] sm:$0xff]   ;;  %v352_v2 = vld [vmem:[%s464_s1 + $0x48] sm:$0xff]   ;;  %v354_v4 = vld [vmem:[%s464_s1 + $0x50] sm:$0xff]  }
   0x2   :  { %v351_v1 = vld [vmem:[%s464_s1] sm:$0xff]   ;;  %306 = vmatprep.subr.bf16.mxu0 %v350_v0  ;;  %334 = vmatprep.subr.bf16.mxu1 %v350_v0  ;;  %v353_v3 = vld [vmem:[%s464_s1 + $0x8] sm:$0xff]   ;;  %v355_v5 = vld [vmem:[%s464_s1 + $0x10] sm:$0xff]  }
   0x3   :  { %307 = vmatpush3.bf16.msra.mxu0 %v351_v1  ;;  %342 = vmatpush3.bf16.msra.mxu1 %v351_v1  ;;  %v356_v6 = vld [vmem:[%s464_s1 + $0x58] sm:$0xff]   ;;  %v358_v8 = vld [vmem:[%s464_s1 + $0x60] sm:$0xff]   ;;  %v360_v10 = vld [vmem:[%s464_s1 + $0x68] sm:$0xff]  }
   0x4   :  { %308 = vmatprep.subr.bf16.mxu0 %v352_v2  ;;  %335 = vmatprep.subr.bf16.mxu1 %v352_v2  ;;  %v357_v7 = vld [vmem:[%s464_s1 + $0x18] sm:$0xff]   ;;  %v359_v9 = vld [vmem:[%s464_s1 + $0x20] sm:$0xff]   ;;  %v361_v13 = vld [vmem:[%s464_s1 + $0x28] sm:$0xff]  }
   0x5   :  { %v368_v11 = vld [vmem:[%s465_s0 + $0x4] ss:$8 sps:$4 sm:$0xff]   ;;  %v371_v12 = vld [vmem:[%s465_s0 + $0x14] ss:$8 sps:$4 sm:$0xff]   ;;  %v366_v18 = vld [vmem:[%s465_s0] ss:$8 sps:$4 sm:$0xff]  }
   0x6   :  { %v362_v14 = vld [vmem:[%s464_s1 + $0x70] sm:$0xff]   ;;  %198 = vmatprep.mubr.bf16.mxu0 %v368_v11  ;;  %206 = vmatprep.mubr.bf16.mxu1 %v371_v12  ;;  %v364_v16 = vld [vmem:[%s464_s1 + $0x78] sm:$0xff]  }
   0x7   :  { %309 = vmatpush3.bf16.msra.mxu0 %v353_v3  ;;  %343 = vmatpush3.bf16.msra.mxu1 %v353_v3  ;;  %v363_v15 = vld [vmem:[%s464_s1 + $0x30] sm:$0xff]   ;;  %v365_v17 = vld [vmem:[%s464_s1 + $0x38] sm:$0xff]  }
   0x8   :  { %310 = vmatprep.subr.bf16.mxu0 %v354_v4  ;;  %336 = vmatprep.subr.bf16.mxu1 %v354_v4  ;;  %v369_v19 = vld [vmem:[%s465_s0 + $0x10] ss:$8 sps:$4 sm:$0xff]  }
   0xb   :  { %311 = vmatpush3.bf16.msra.mxu0 %v355_v5  ;;  %344 = vmatpush3.bf16.msra.mxu1 %v355_v5 }
   0xc   :  { %312 = vmatprep.subr.bf16.mxu0 %v356_v6  ;;  %337 = vmatprep.subr.bf16.mxu1 %v356_v6 }
   0xf   :  { %313 = vmatpush3.bf16.msra.mxu0 %v357_v7  ;;  %345 = vmatpush3.bf16.msra.mxu1 %v357_v7 }
  0x10   :  { %314 = vmatprep.subr.bf16.mxu0 %v358_v8  ;;  %338 = vmatprep.subr.bf16.mxu1 %v358_v8 }
  0x13   :  { %315 = vmatpush3.bf16.msra.mxu0 %v359_v9  ;;  %346 = vmatpush3.bf16.msra.mxu1 %v359_v9 }
  0x14   :  { %316 = vmatprep.subr.bf16.mxu0 %v360_v10  ;;  %339 = vmatprep.subr.bf16.mxu1 %v360_v10 }
  0x17   :  { %317 = vmatpush3.bf16.msra.mxu0 %v361_v13  ;;  %347 = vmatpush3.bf16.msra.mxu1 %v361_v13 }
  0x18   :  { %318 = vmatprep.subr.bf16.mxu0 %v362_v14  ;;  %340 = vmatprep.subr.bf16.mxu1 %v362_v14 }
  0x1b   :  { %319 = vmatpush3.bf16.msra.mxu0 %v363_v15  ;;  %348 = vmatpush3.bf16.msra.mxu1 %v363_v15 }
  0x1c   :  { %320 = vmatprep.subr.bf16.mxu0 %v364_v16  ;;  %341 = vmatprep.subr.bf16.mxu1 %v364_v16 }
  0x1f   :  { %321 = vmatpush3.bf16.msra.mxu0 %v365_v17  ;;  %349 = vmatpush3.bf16.msra.mxu1 %v365_v17 }
  0x22   :  { %199 = vmatmul.mubr.bf16.vlgmr.msra.gmra.mrb[0].mxu0 %v366_v18  ;;  %207 = vmatmul.mubr.bf16.vlgmr.msra.gmra.mrb[0].mxu1 %v369_v19 }
  0xf5   :  { %v322_v20 = vpop.f32.mrb[0].mxu0  ;;  %v328_v21 = vpop.f32.mrb[0].mxu1 }
  0xf6   :  { %v323_v22 = vpop.f32.mrb[1].mxu0  ;;  %v329_v23 = vpop.f32.mrb[1].mxu1 }
  0xf7   :  { %v324_v24 = vadd.f32 %v323_v22, %v322_v20  ;;  %v325_v25 = vpop.f32.mrb[2].mxu0  ;;  %v330_v26 = vadd.f32 %v329_v23, %v328_v21  ;;  %v331_v27 = vpop.f32.mrb[2].mxu1 }
  0xf8   :  { %v326_v28 = vpop.f32.mrb[3].mxu0  ;;  %v332_v29 = vpop.f32.mrb[3].mxu1 }
  0xf9   :  { %v327_v30 = vadd.f32 %v326_v28, %v325_v25  ;;  %v333_v31 = vadd.f32 %v332_v29, %v331_v27  ;;  %v245_v32 = vmul.f32 %v324_v24, %v324_v24  ;;  %v247_v33 = vmul.f32 %v330_v26, %v330_v26 }
  0xfb   :  { %v298_v34 = vpack.c.bf16 %v327_v30, %v324_v24  ;;  %v235_v35 = vadd.f32 %v327_v30, %v324_v24  ;;  %v246_v36 = vmul.f32 %v327_v30, %v327_v30  ;;  %v303_v37 = vpack.c.bf16 %v333_v31, %v330_v26 }
  0xfc   :  { %v248_v41 = vmul.f32 %v333_v31, %v333_v31 }
  0xfd   :  { %299 = vst [vmem:[%s466_s2] sm:$0xff] %v298_v34   ;;  %v249_v38 = vadd.f32 %v246_v36, %v245_v32  ;;  %305 = vst [vmem:[%s466_s2 + $0x8] sm:$0xff] %v303_v37   ;;  %v236_v39 = vadd.f32 %v330_v26, %v235_v35 }
  0xff   :  { %v237_v40 = vadd.f32 %v333_v31, %v236_v39  ;;  %v250_v42 = vadd.f32 %v249_v38, %v247_v33 }
 0x101   :  { %v238_v43 = vrot.slane %v237_v40, 4  ;;  %v251_v44 = vadd.f32 %v250_v42, %v248_v41 }
 0x103   :  { %v239_v45 = vadd.f32 %v238_v43, %v237_v40  ;;  %v252_v46 = vrot.slane %v251_v44, 4 }
 0x105   :  { %v240_v47 = vrot.slane %v239_v45, 2  ;;  %v253_v48 = vadd.f32 %v252_v46, %v251_v44 }
 0x107   :  { %v241_v49 = vadd.f32 %v240_v47, %v239_v45  ;;  %v254_v50 = vrot.slane %v253_v48, 2 }
 0x109   :  { %v242_v51 = vrot.slane %v241_v49, 1  ;;  %v255_v52 = vadd.f32 %v254_v50, %v253_v48 }
 0x10b   :  { %v243_v53 = vadd.f32 %v242_v51, %v241_v49  ;;  %v256_v54 = vrot.slane %v255_v52, 1 }
 0x10d   :  { %244 = vst [vmem:[%s467_s3] sm:$0x1] %v243_v53  ;;  %v257_v55 = vadd.f32 %v256_v54, %v255_v52 }
 0x10f   :  { %258 = vst [vmem:[%s467_s3 + $0x1] sm:$0x1] %v257_v55 }

// kernel: _lambda_.8
= control target key start
LH: loop header
LB: loop body
LE: loop exit
PB: predicated region body
PF: predicated region fallthrough
CT: control target
= control target key end

     0   :  { %s779_s1 = inlined_call_operand.vmem [shape: bf16[512,128], index: 1, kind: input, shape index: {}]   ;;  %s780_s0 = inlined_call_operand.vmem [shape: bf16[32,512], index: 0, kind: input, shape index: {}]   ;;  %s781_s2 = inlined_call_operand.vmem [shape: bf16[32,128], index: 2, kind: output, shape index: {0}]   ;;  %s782_s3 = inlined_call_operand.vmem [shape: f32[1,2,128], index: 3, kind: output, shape index: {1}]  }
   0x1   :  { %v583_v0 = vld [vmem:[%s779_s1 + $0x40] sm:$0xff]   ;;  %v587_v4 = vld [vmem:[%s779_s1 + $0x48] sm:$0xff]   ;;  %v591_v8 = vld [vmem:[%s779_s1 + $0x50] sm:$0xff]  }
   0x2   :  { %v584_v1 = vld [vmem:[%s779_s1 + $0xc0] sm:$0xff]   ;;  %527 = vmatprep.subr.bf16.mxu0 %v583_v0  ;;  %v588_v5 = vld [vmem:[%s779_s1 + $0xc8] sm:$0xff]   ;;  %v592_v9 = vld [vmem:[%s779_s1 + $0xd0] sm:$0xff]  }
   0x3   :  { %v585_v2 = vld [vmem:[%s779_s1] sm:$0xff]   ;;  %555 = vmatprep.subr.bf16.mxu1 %v584_v1  ;;  %v589_v6 = vld [vmem:[%s779_s1 + $0x8] sm:$0xff]   ;;  %v593_v10 = vld [vmem:[%s779_s1 + $0x10] sm:$0xff]  }
   0x4   :  { %v586_v3 = vld [vmem:[%s779_s1 + $0x80] sm:$0xff]   ;;  %528 = vmatpush3.bf16.msra.mxu0 %v585_v2  ;;  %v590_v7 = vld [vmem:[%s779_s1 + $0x88] sm:$0xff]   ;;  %v594_v11 = vld [vmem:[%s779_s1 + $0x90] sm:$0xff]  }
   0x5   :  { %556 = vmatpush3.bf16.msra.mxu1 %v586_v3  ;;  %529 = vmatprep.subr.bf16.mxu0 %v587_v4  ;;  %v595_v12 = vld [vmem:[%s779_s1 + $0x58] sm:$0xff]   ;;  %v599_v16 = vld [vmem:[%s779_s1 + $0x60] sm:$0xff]   ;;  %v603_v20 = vld [vmem:[%s779_s1 + $0x68] sm:$0xff]  }
   0x6   :  { %557 = vmatprep.subr.bf16.mxu1 %v588_v5  ;;  %v596_v13 = vld [vmem:[%s779_s1 + $0xd8] sm:$0xff]   ;;  %v600_v17 = vld [vmem:[%s779_s1 + $0xe0] sm:$0xff]   ;;  %v604_v21 = vld [vmem:[%s779_s1 + $0xe8] sm:$0xff]  }
   0x7   :  { %v597_v14 = vld [vmem:[%s779_s1 + $0x18] sm:$0xff]   ;;  %v601_v18 = vld [vmem:[%s779_s1 + $0x20] sm:$0xff]   ;;  %v605_v22 = vld [vmem:[%s779_s1 + $0x28] sm:$0xff]  }
   0x8   :  { %530 = vmatpush3.bf16.msra.mxu0 %v589_v6  ;;  %v598_v15 = vld [vmem:[%s779_s1 + $0x98] sm:$0xff]   ;;  %v602_v19 = vld [vmem:[%s779_s1 + $0xa0] sm:$0xff]   ;;  %v606_v23 = vld [vmem:[%s779_s1 + $0xa8] sm:$0xff]  }
   0x9   :  { %558 = vmatpush3.bf16.msra.mxu1 %v590_v7  ;;  %531 = vmatprep.subr.bf16.mxu0 %v591_v8  ;;  %v607_v24 = vld [vmem:[%s779_s1 + $0x70] sm:$0xff]   ;;  %v611_v28 = vld [vmem:[%s779_s1 + $0x78] sm:$0xff]  }
   0xa   :  { %559 = vmatprep.subr.bf16.mxu1 %v592_v9  ;;  %v608_v25 = vld [vmem:[%s779_s1 + $0xf0] sm:$0xff]   ;;  %v612_v29 = vld [vmem:[%s779_s1 + $0xf8] sm:$0xff]  }
   0xb   :  { %v609_v26 = vld [vmem:[%s779_s1 + $0x30] sm:$0xff]   ;;  %v613_v30 = vld [vmem:[%s779_s1 + $0x38] sm:$0xff]  }
   0xc   :  { %532 = vmatpush3.bf16.msra.mxu0 %v593_v10  ;;  %v610_v27 = vld [vmem:[%s779_s1 + $0xb0] sm:$0xff]   ;;  %v614_v31 = vld [vmem:[%s779_s1 + $0xb8] sm:$0xff]  }
   0xd   :  { %560 = vmatpush3.bf16.msra.mxu1 %v594_v11  ;;  %533 = vmatprep.subr.bf16.mxu0 %v595_v12  ;;  %v615_v32 = vld [vmem:[%s780_s0] ss:$16 sps:$4 sm:$0xff]   ;;  %v617_v33 = vld [vmem:[%s780_s0 + $0x4] ss:$16 sps:$4 sm:$0xff]   ;;  %v618_v34 = vld [vmem:[%s780_s0 + $0x8] ss:$16 sps:$4 sm:$0xff]  }
   0xe   :  { %561 = vmatprep.subr.bf16.mxu1 %v596_v13  ;;  %v620_v35 = vld [vmem:[%s780_s0 + $0xc] ss:$16 sps:$4 sm:$0xff]   ;;  %350 = vmatprep.mubr.bf16.mxu0 %v617_v33  ;;  %v621_v36 = vld [vmem:[%s780_s0 + $0x24] ss:$16 sps:$4 sm:$0xff]   ;;  %v625_v38 = vld [vmem:[%s780_s0 + $0x20] ss:$16 sps:$4 sm:$0xff]  }
   0xf   :  { %399 = vmatprep.mubr.bf16.mxu1 %v620_v35  ;;  %v623_v37 = vld [vmem:[%s780_s0 + $0x2c] ss:$16 sps:$4 sm:$0xff]   ;;  %v626_v39 = vld [vmem:[%s780_s0 + $0x28] ss:$16 sps:$4 sm:$0xff]  }
  0x10   :  { %534 = vmatpush3.bf16.msra.mxu0 %v597_v14 }
  0x11   :  { %562 = vmatpush3.bf16.msra.mxu1 %v598_v15  ;;  %535 = vmatprep.subr.bf16.mxu0 %v599_v16 }
  0x12   :  { %563 = vmatprep.subr.bf16.mxu1 %v600_v17 }
  0x14   :  { %536 = vmatpush3.bf16.msra.mxu0 %v601_v18 }
  0x15   :  { %564 = vmatpush3.bf16.msra.mxu1 %v602_v19  ;;  %537 = vmatprep.subr.bf16.mxu0 %v603_v20 }
  0x16   :  { %565 = vmatprep.subr.bf16.mxu1 %v604_v21 }
  0x18   :  { %538 = vmatpush3.bf16.msra.mxu0 %v605_v22 }
  0x19   :  { %566 = vmatpush3.bf16.msra.mxu1 %v606_v23  ;;  %539 = vmatprep.subr.bf16.mxu0 %v607_v24 }
  0x1a   :  { %567 = vmatprep.subr.bf16.mxu1 %v608_v25 }
  0x1c   :  { %540 = vmatpush3.bf16.msra.mxu0 %v609_v26 }
  0x1d   :  { %568 = vmatpush3.bf16.msra.mxu1 %v610_v27  ;;  %541 = vmatprep.subr.bf16.mxu0 %v611_v28 }
  0x1e   :  { %569 = vmatprep.subr.bf16.mxu1 %v612_v29 }
  0x20   :  { %542 = vmatpush3.bf16.msra.mxu0 %v613_v30 }
  0x21   :  { %570 = vmatpush3.bf16.msra.mxu1 %v614_v31 }
  0x23   :  { %351 = vmatmul.mubr.bf16.vlgmr.msra.gmra.mrb[0].mxu0 %v615_v32 }
  0x24   :  { %400 = vmatmul.mubr.bf16.vlgmr.msra.gmra.mrb[0].mxu1 %v618_v34  ;;  %358 = vmatprep.mubr.bf16.mxu0 %v621_v36 }
  0x25   :  { %407 = vmatprep.mubr.bf16.mxu1 %v623_v37 }
  0x2b   :  { %359 = vmatmul.mubr.bf16.gmra.mrb[4].mxu0 %v625_v38 }
  0x2c   :  { %408 = vmatmul.mubr.bf16.gmra.mrb[4].mxu1 %v626_v39 }
  0xf6   :  { %v543_v40 = vpop.f32.mrb[0].mxu0 }
  0xf7   :  { %v571_v41 = vpop.f32.mrb[0].mxu1  ;;  %v544_v42 = vpop.f32.mrb[1].mxu0 }
  0xf8   :  { %v545_v43 = vadd.f32 %v544_v42, %v543_v40  ;;  %v572_v44 = vpop.f32.mrb[1].mxu1  ;;  %v546_v45 = vpop.f32.mrb[2].mxu0 }
  0xf9   :  { %v573_v46 = vadd.f32 %v572_v44, %v571_v41  ;;  %v574_v47 = vpop.f32.mrb[2].mxu1  ;;  %v547_v48 = vpop.f32.mrb[3].mxu0 }
  0xfa   :  { %v548_v49 = vadd.f32 %v547_v48, %v546_v45  ;;  %v575_v50 = vpop.f32.mrb[3].mxu1 }
  0xfb   :  { %v402_v51 = vadd.f32 %v573_v46, %v545_v43  ;;  %v576_v52 = vadd.f32 %v575_v50, %v574_v47 }
  0xfd   :  { %v405_v53 = vadd.f32 %v576_v52, %v548_v49  ;;  %v446_v55 = vmul.f32 %v402_v51, %v402_v51 }
  0xfe   :  { %v549_v54 = vpop.f32.mrb[4].mxu0 }
  0xff   :  { %v519_v56 = vpack.c.bf16 %v405_v53, %v402_v51  ;;  %v436_v57 = vadd.f32 %v405_v53, %v402_v51  ;;  %v447_v58 = vmul.f32 %v405_v53, %v405_v53  ;;  %v577_v59 = vpop.f32.mrb[4].mxu1  ;;  %v550_v60 = vpop.f32.mrb[5].mxu0 }
 0x100   :  { %v551_v61 = vadd.f32 %v550_v60, %v549_v54  ;;  %v578_v62 = vpop.f32.mrb[5].mxu1  ;;  %v552_v63 = vpop.f32.mrb[6].mxu0 }
 0x101   :  { %520 = vst [vmem:[%s781_s2] sm:$0xff] %v519_v56   ;;  %v450_v0 = vadd.f32 %v447_v58, %v446_v55  ;;  %v579_v1 = vadd.f32 %v578_v62, %v577_v59  ;;  %v580_v2 = vpop.f32.mrb[6].mxu1  ;;  %v553_v3 = vpop.f32.mrb[7].mxu0 }
 0x102   :  { %v554_v4 = vadd.f32 %v553_v3, %v552_v63  ;;  %v581_v5 = vpop.f32.mrb[7].mxu1 }
 0x103   :  { %v410_v6 = vadd.f32 %v579_v1, %v551_v61  ;;  %v582_v7 = vadd.f32 %v581_v5, %v580_v2 }
 0x105   :  { %v437_v8 = vadd.f32 %v436_v57, %v410_v6  ;;  %v448_v9 = vmul.f32 %v410_v6, %v410_v6  ;;  %v413_v10 = vadd.f32 %v582_v7, %v554_v4 }
 0x107   :  { %v451_v11 = vadd.f32 %v450_v0, %v448_v9  ;;  %v524_v12 = vpack.c.bf16 %v413_v10, %v410_v6  ;;  %v438_v13 = vadd.f32 %v437_v8, %v413_v10  ;;  %v449_v14 = vmul.f32 %v413_v10, %v413_v10 }
 0x109   :  { %526 = vst [vmem:[%s781_s2 + $0x8] sm:$0xff] %v524_v12   ;;  %v439_v15 = vrot.slane %v438_v13, 4  ;;  %v452_v16 = vadd.f32 %v451_v11, %v449_v14 }
 0x10b   :  { %v440_v17 = vadd.f32 %v439_v15, %v438_v13  ;;  %v453_v18 = vrot.slane %v452_v16, 4 }
 0x10d   :  { %v441_v19 = vrot.slane %v440_v17, 2  ;;  %v454_v20 = vadd.f32 %v453_v18, %v452_v16 }
 0x10f   :  { %v442_v21 = vadd.f32 %v441_v19, %v440_v17  ;;  %v455_v22 = vrot.slane %v454_v20, 2 }
 0x111   :  { %v443_v23 = vrot.slane %v442_v21, 1  ;;  %v456_v24 = vadd.f32 %v455_v22, %v454_v20 }
 0x113   :  { %v444_v25 = vadd.f32 %v443_v23, %v442_v21  ;;  %v457_v26 = vrot.slane %v456_v24, 1 }
 0x115   :  { %445 = vst [vmem:[%s782_s3] sm:$0x1] %v444_v25  ;;  %v458_v27 = vadd.f32 %v457_v26, %v456_v24 }
 0x117   :  { %459 = vst [vmem:[%s782_s3 + $0x1] sm:$0x1] %v458_v27 }

// kernel: _lambda_.9
= control target key start
LH: loop header
LB: loop body
LE: loop exit
PB: predicated region body
PF: predicated region fallthrough
CT: control target
= control target key end

     0   :  { %s1222_s1 = inlined_call_operand.vmem [shape: bf16[1024,128], index: 1, kind: input, shape index: {}]   ;;  %s1223_s0 = inlined_call_operand.vmem [shape: bf16[16,1024], index: 0, kind: input, shape index: {}]   ;;  %s1224_s2 = inlined_call_operand.vmem [shape: f32[1,128], index: 2, kind: input, shape index: {}]   ;;  %s1225_s3 = inlined_call_operand.vmem [shape: f32[16,128], index: 3, kind: output, shape index: {}]  }
   0x1   :  { %v913_v0 = vld [vmem:[%s1222_s1 + $0x40] sm:$0xff]   ;;  %v917_v4 = vld [vmem:[%s1222_s1 + $0x48] sm:$0xff]   ;;  %v921_v8 = vld [vmem:[%s1222_s1 + $0x50] sm:$0xff]  }
   0x2   :  { %v914_v1 = vld [vmem:[%s1222_s1 + $0xc0] sm:$0xff]   ;;  %825 = vmatprep.subr.bf16.mxu0 %v913_v0  ;;  %v918_v5 = vld [vmem:[%s1222_s1 + $0xc8] sm:$0xff]   ;;  %v922_v9 = vld [vmem:[%s1222_s1 + $0xd0] sm:$0xff]  }
   0x3   :  { %v915_v2 = vld [vmem:[%s1222_s1] sm:$0xff]   ;;  %847 = vmatprep.subr.bf16.mxu1 %v914_v1  ;;  %v919_v6 = vld [vmem:[%s1222_s1 + $0x8] sm:$0xff]   ;;  %v923_v10 = vld [vmem:[%s1222_s1 + $0x10] sm:$0xff]  }
   0x4   :  { %v916_v3 = vld [vmem:[%s1222_s1 + $0x80] sm:$0xff]   ;;  %826 = vmatpush3.bf16.msra.mxu0 %v915_v2  ;;  %v920_v7 = vld [vmem:[%s1222_s1 + $0x88] sm:$0xff]   ;;  %v924_v11 = vld [vmem:[%s1222_s1 + $0x90] sm:$0xff]  }
   0x5   :  { %848 = vmatpush3.bf16.msra.mxu1 %v916_v3  ;;  %827 = vmatprep.subr.bf16.mxu0 %v917_v4  ;;  %v925_v12 = vld [vmem:[%s1222_s1 + $0x58] sm:$0xff]   ;;  %v929_v16 = vld [vmem:[%s1222_s1 + $0x60] sm:$0xff]   ;;  %v933_v20 = vld [vmem:[%s1222_s1 + $0x68] sm:$0xff]  }
   0x6   :  { %849 = vmatprep.subr.bf16.mxu1 %v918_v5  ;;  %v926_v13 = vld [vmem:[%s1222_s1 + $0xd8] sm:$0xff]   ;;  %v930_v17 = vld [vmem:[%s1222_s1 + $0xe0] sm:$0xff]   ;;  %v934_v21 = vld [vmem:[%s1222_s1 + $0xe8] sm:$0xff]  }
   0x7   :  { %v927_v14 = vld [vmem:[%s1222_s1 + $0x18] sm:$0xff]   ;;  %v931_v18 = vld [vmem:[%s1222_s1 + $0x20] sm:$0xff]   ;;  %v935_v22 = vld [vmem:[%s1222_s1 + $0x28] sm:$0xff]  }
   0x8   :  { %828 = vmatpush3.bf16.msra.mxu0 %v919_v6  ;;  %v928_v15 = vld [vmem:[%s1222_s1 + $0x98] sm:$0xff]   ;;  %v932_v19 = vld [vmem:[%s1222_s1 + $0xa0] sm:$0xff]   ;;  %v936_v23 = vld [vmem:[%s1222_s1 + $0xa8] sm:$0xff]  }
   0x9   :  { %850 = vmatpush3.bf16.msra.mxu1 %v920_v7  ;;  %829 = vmatprep.subr.bf16.mxu0 %v921_v8  ;;  %v937_v24 = vld [vmem:[%s1222_s1 + $0x70] sm:$0xff]   ;;  %v941_v28 = vld [vmem:[%s1222_s1 + $0x78] sm:$0xff]   ;;  %v15_v32 = vld [vmem:[%s1223_s0] sm:$0xff] }
   0xa   :  { %851 = vmatprep.subr.bf16.mxu1 %v922_v9  ;;  %v938_v25 = vld [vmem:[%s1222_s1 + $0xf0] sm:$0xff]   ;;  %v942_v29 = vld [vmem:[%s1222_s1 + $0xf8] sm:$0xff]   ;;  %v19_v33 = vld [vmem:[%s1223_s0 + $0x20] sm:$0xff] }
   0xb   :  { %v939_v26 = vld [vmem:[%s1222_s1 + $0x30] sm:$0xff]   ;;  %v943_v30 = vld [vmem:[%s1222_s1 + $0x38] sm:$0xff]   ;;  %v16_v34 = vld [vmem:[%s1223_s0 + $0x8] sm:$0xff]  ;;  %v753_v35 = vcombine.low %v15_v32, %v19_v33  ;;  %v754_v36 = vcombine.high %v15_v32, %v19_v33 }
   0xc   :  { %830 = vmatpush3.bf16.msra.mxu0 %v923_v10  ;;  %v940_v27 = vld [vmem:[%s1222_s1 + $0xb0] sm:$0xff]   ;;  %v944_v31 = vld [vmem:[%s1222_s1 + $0xb8] sm:$0xff]   ;;  %v20_v37 = vld [vmem:[%s1223_s0 + $0x28] sm:$0xff] }
   0xd   :  { %852 = vmatpush3.bf16.msra.mxu1 %v924_v11  ;;  %831 = vmatprep.subr.bf16.mxu0 %v925_v12  ;;  %v755_v38 = vcombine.low %v16_v34, %v20_v37  ;;  %v756_v39 = vcombine.high %v16_v34, %v20_v37  ;;  %v945_v40 = vld [vmem:[%s1222_s1 + $0x140] sm:$0xff]   ;;  %v949_v44 = vld [vmem:[%s1222_s1 + $0x148] sm:$0xff]   ;;  %v953_v48 = vld [vmem:[%s1222_s1 + $0x150] sm:$0xff]  }
   0xe   :  { %853 = vmatprep.subr.bf16.mxu1 %v926_v13  ;;  %614 = vmatprep.mubr.bf16.mxu0 %v754_v36  ;;  %v946_v41 = vld [vmem:[%s1222_s1 + $0x1c0] sm:$0xff]   ;;  %v950_v45 = vld [vmem:[%s1222_s1 + $0x1c8] sm:$0xff]   ;;  %v954_v49 = vld [vmem:[%s1222_s1 + $0x1d0] sm:$0xff]  }
   0xf   :  { %655 = vmatprep.mubr.bf16.mxu1 %v756_v39  ;;  %v947_v42 = vld [vmem:[%s1222_s1 + $0x100] sm:$0xff]   ;;  %v951_v46 = vld [vmem:[%s1222_s1 + $0x108] sm:$0xff]   ;;  %v955_v50 = vld [vmem:[%s1222_s1 + $0x110] sm:$0xff]  }
  0x10   :  { %832 = vmatpush3.bf16.msra.mxu0 %v927_v14  ;;  %v948_v43 = vld [vmem:[%s1222_s1 + $0x180] sm:$0xff]   ;;  %v952_v47 = vld [vmem:[%s1222_s1 + $0x188] sm:$0xff]   ;;  %v956_v51 = vld [vmem:[%s1222_s1 + $0x190] sm:$0xff]  }
  0x11   :  { %854 = vmatpush3.bf16.msra.mxu1 %v928_v15  ;;  %833 = vmatprep.subr.bf16.mxu0 %v929_v16  ;;  %v957_v52 = vld [vmem:[%s1222_s1 + $0x158] sm:$0xff]   ;;  %v961_v56 = vld [vmem:[%s1222_s1 + $0x160] sm:$0xff]   ;;  %v965_v60 = vld [vmem:[%s1222_s1 + $0x168] sm:$0xff]  }
  0x12   :  { %855 = vmatprep.subr.bf16.mxu1 %v930_v17  ;;  %v958_v53 = vld [vmem:[%s1222_s1 + $0x1d8] sm:$0xff]   ;;  %v962_v57 = vld [vmem:[%s1222_s1 + $0x1e0] sm:$0xff]   ;;  %v966_v61 = vld [vmem:[%s1222_s1 + $0x1e8] sm:$0xff]  }
  0x13   :  { %v959_v54 = vld [vmem:[%s1222_s1 + $0x118] sm:$0xff]   ;;  %v963_v58 = vld [vmem:[%s1222_s1 + $0x120] sm:$0xff]   ;;  %v967_v62 = vld [vmem:[%s1222_s1 + $0x128] sm:$0xff]  }
  0x14   :  { %834 = vmatpush3.bf16.msra.mxu0 %v931_v18  ;;  %v960_v55 = vld [vmem:[%s1222_s1 + $0x198] sm:$0xff]   ;;  %v964_v59 = vld [vmem:[%s1222_s1 + $0x1a0] sm:$0xff]   ;;  %v968_v63 = vld [vmem:[%s1222_s1 + $0x1a8] sm:$0xff]  }
  0x15   :  { %856 = vmatpush3.bf16.msra.mxu1 %v932_v19  ;;  %835 = vmatprep.subr.bf16.mxu0 %v933_v20  ;;  %v969_v0 = vld [vmem:[%s1222_s1 + $0x170] sm:$0xff]   ;;  %v973_v4 = vld [vmem:[%s1222_s1 + $0x178] sm:$0xff]   ;;  %v752_v18 = vld [vmem:[%s1224_s2] ss:$0 sm:$0xff] }
  0x16   :  { %857 = vmatprep.subr.bf16.mxu1 %v934_v21  ;;  %v970_v1 = vld [vmem:[%s1222_s1 + $0x1f0] sm:$0xff]   ;;  %v974_v5 = vld [vmem:[%s1222_s1 + $0x1f8] sm:$0xff]  }
  0x17   :  { %v971_v2 = vld [vmem:[%s1222_s1 + $0x130] sm:$0xff]   ;;  %v975_v6 = vld [vmem:[%s1222_s1 + $0x138] sm:$0xff]  }
  0x18   :  { %836 = vmatpush3.bf16.msra.mxu0 %v935_v22  ;;  %v972_v3 = vld [vmem:[%s1222_s1 + $0x1b0] sm:$0xff]   ;;  %v976_v7 = vld [vmem:[%s1222_s1 + $0x1b8] sm:$0xff]  }
  0x19   :  { %858 = vmatpush3.bf16.msra.mxu1 %v936_v23  ;;  %837 = vmatprep.subr.bf16.mxu0 %v937_v24  ;;  %v17_v8 = vld [vmem:[%s1223_s0 + $0x10] sm:$0xff]  ;;  %v18_v12 = vld [vmem:[%s1223_s0 + $0x18] sm:$0xff] }
  0x1a   :  { %859 = vmatprep.subr.bf16.mxu1 %v938_v25  ;;  %v21_v9 = vld [vmem:[%s1223_s0 + $0x30] sm:$0xff]  ;;  %v22_v13 = vld [vmem:[%s1223_s0 + $0x38] sm:$0xff] }
  0x1b   :  { %v757_v10 = vcombine.low %v17_v8, %v21_v9  ;;  %v758_v11 = vcombine.high %v17_v8, %v21_v9  ;;  %v759_v14 = vcombine.low %v18_v12, %v22_v13  ;;  %v760_v15 = vcombine.high %v18_v12, %v22_v13 }
  0x1c   :  { %838 = vmatpush3.bf16.msra.mxu0 %v939_v26 }
  0x1d   :  { %860 = vmatpush3.bf16.msra.mxu1 %v940_v27  ;;  %839 = vmatprep.subr.bf16.mxu0 %v941_v28 }
  0x1e   :  { %861 = vmatprep.subr.bf16.mxu1 %v942_v29 }
  0x20   :  { %840 = vmatpush3.bf16.msra.mxu0 %v943_v30 }
  0x21   :  { %862 = vmatpush3.bf16.msra.mxu1 %v944_v31  ;;  %869 = vmatprep.subr.bf16.mxu0 %v945_v40 }
  0x22   :  { %891 = vmatprep.subr.bf16.mxu1 %v946_v41 }
  0x23   :  { %615 = vmatmul.mubr.bf16.vlgmr.msra.gmra.mrb[0].mxu0 %v753_v35 }
  0x24   :  { %656 = vmatmul.mubr.bf16.vlgmr.msra.gmra.mrb[0].mxu1 %v755_v38  ;;  %870 = vmatpush3.bf16.msra.mxu0 %v947_v42 }
  0x25   :  { %892 = vmatpush3.bf16.msra.mxu1 %v948_v43  ;;  %871 = vmatprep.subr.bf16.mxu0 %v949_v44 }
  0x26   :  { %893 = vmatprep.subr.bf16.mxu1 %v950_v45  ;;  %696 = vmatprep.mubr.bf16.mxu0 %v758_v11 }
  0x27   :  { %737 = vmatprep.mubr.bf16.mxu1 %v760_v15 }
  0x28   :  { %872 = vmatpush3.bf16.msra.mxu0 %v951_v46 }
  0x29   :  { %894 = vmatpush3.bf16.msra.mxu1 %v952_v47  ;;  %873 = vmatprep.subr.bf16.mxu0 %v953_v48 }
  0x2a   :  { %895 = vmatprep.subr.bf16.mxu1 %v954_v49 }
  0x2c   :  { %874 = vmatpush3.bf16.msra.mxu0 %v955_v50 }
  0x2d   :  { %896 = vmatpush3.bf16.msra.mxu1 %v956_v51  ;;  %875 = vmatprep.subr.bf16.mxu0 %v957_v52 }
  0x2e   :  { %897 = vmatprep.subr.bf16.mxu1 %v958_v53 }
  0x30   :  { %876 = vmatpush3.bf16.msra.mxu0 %v959_v54 }
  0x31   :  { %898 = vmatpush3.bf16.msra.mxu1 %v960_v55  ;;  %877 = vmatprep.subr.bf16.mxu0 %v961_v56 }
  0x32   :  { %899 = vmatprep.subr.bf16.mxu1 %v962_v57 }
  0x34   :  { %878 = vmatpush3.bf16.msra.mxu0 %v963_v58 }
  0x35   :  { %900 = vmatpush3.bf16.msra.mxu1 %v964_v59  ;;  %879 = vmatprep.subr.bf16.mxu0 %v965_v60 }
  0x36   :  { %901 = vmatprep.subr.bf16.mxu1 %v966_v61 }
  0x38   :  { %880 = vmatpush3.bf16.msra.mxu0 %v967_v62 }
  0x39   :  { %902 = vmatpush3.bf16.msra.mxu1 %v968_v63  ;;  %881 = vmatprep.subr.bf16.mxu0 %v969_v0 }
  0x3a   :  { %903 = vmatprep.subr.bf16.mxu1 %v970_v1 }
  0x3c   :  { %882 = vmatpush3.bf16.msra.mxu0 %v971_v2 }
  0x3d   :  { %904 = vmatpush3.bf16.msra.mxu1 %v972_v3  ;;  %883 = vmatprep.subr.bf16.mxu0 %v973_v4 }
  0x3e   :  { %905 = vmatprep.subr.bf16.mxu1 %v974_v5 }
  0x40   :  { %884 = vmatpush3.bf16.msra.mxu0 %v975_v6 }
  0x41   :  { %906 = vmatpush3.bf16.msra.mxu1 %v976_v7 }
  0x43   :  { %697 = vmatmul.mubr.bf16.vlgmr.msra.gmra.mrb[4].mxu0 %v757_v10 }
  0x44   :  { %738 = vmatmul.mubr.bf16.vlgmr.msra.gmra.mrb[4].mxu1 %v759_v14 }
  0xf6   :  { %v841_v16 = vpop.f32.mrb[0].mxu0 }
  0xf7   :  { %v863_v17 = vpop.f32.mrb[0].mxu1  ;;  %v842_v19 = vpop.f32.mrb[1].mxu0 }
  0xf8   :  { %v843_v20 = vadd.f32 %v842_v19, %v841_v16  ;;  %v864_v21 = vpop.f32.mrb[1].mxu1  ;;  %v844_v22 = vpop.f32.mrb[2].mxu0 }
  0xf9   :  { %v865_v23 = vadd.f32 %v864_v21, %v863_v17  ;;  %v866_v24 = vpop.f32.mrb[2].mxu1  ;;  %v845_v25 = vpop.f32.mrb[3].mxu0 }
  0xfa   :  { %v617_v26 = vadd.f32 %v843_v20, %v752_v18  ;;  %v846_v27 = vadd.f32 %v845_v25, %v844_v22  ;;  %v867_v28 = vpop.f32.mrb[3].mxu1 }
  0xfb   :  { %v868_v29 = vadd.f32 %v867_v28, %v866_v24 }
  0xfc   :  { %v658_v30 = vadd.f32 %v865_v23, %v617_v26  ;;  %v620_v31 = vadd.f32 %v846_v27, %v752_v18 }
  0xfe   :  { %v661_v32 = vadd.f32 %v868_v29, %v620_v31 }
 0x116   :  { %v885_v33 = vpop.f32.mrb[4].mxu0 }
 0x117   :  { %v907_v34 = vpop.f32.mrb[4].mxu1  ;;  %v886_v35 = vpop.f32.mrb[5].mxu0 }
 0x118   :  { %v887_v36 = vadd.f32 %v886_v35, %v885_v33  ;;  %v908_v37 = vpop.f32.mrb[5].mxu1  ;;  %v888_v38 = vpop.f32.mrb[6].mxu0 }
 0x119   :  { %v909_v39 = vadd.f32 %v908_v37, %v907_v34  ;;  %v910_v40 = vpop.f32.mrb[6].mxu1  ;;  %v889_v41 = vpop.f32.mrb[7].mxu0 }
 0x11a   :  { %v699_v42 = vadd.f32 %v887_v36, %v658_v30  ;;  %v890_v43 = vadd.f32 %v889_v41, %v888_v38  ;;  %v911_v44 = vpop.f32.mrb[7].mxu1 }
 0x11b   :  { %v912_v45 = vadd.f32 %v911_v44, %v910_v40 }
 0x11c   :  { %v740_v46 = vadd.f32 %v909_v39, %v699_v42  ;;  %v702_v47 = vadd.f32 %v890_v43, %v661_v32 }
 0x11e   :  { %746 = vst [vmem:[%s1225_s3] sm:$0xff] %v740_v46  ;;  %v743_v48 = vadd.f32 %v912_v45, %v702_v47 }
 0x120   :  { %747 = vst [vmem:[%s1225_s3 + $0x8] sm:$0xff] %v743_v48 }

</bundles_post_ra>
